<compile_context>
chip_gen: v7x
topology: tpu7x:2x2x1
jax: 0.10.0
libtpu: 0.0.40
codegen_flags: <defaults>
</compile_context>

<pallas_src>
import functools

import jax
import jax.numpy as jnp
from jax.experimental import pallas as pl
from jax.experimental.pallas import tpu as pltpu


_LANES = 128
_OUT_FEATURES = 32                      # layer-4 width of the module
_GROUP = _LANES // _OUT_FEATURES        # 4 sub-rows packed per lane-dense row

_VMEM_LIMIT = 48 * 1024 * 1024          # explicit scoped-VMEM limit (< v7x 64 MiB physical)
_VMEM_BUDGET = 32 * 1024 * 1024         # cap our own estimate well below the limit


def _round_up(a, m):
    return ((a + m - 1) // m) * m


def _vmem_bytes(bq):
    """Rough per-tile VMEM estimate (f32 x / f32 out), bq = packed rows per tile.
      x2 in : double-buffered, 64 lanes padded to 128 -> 2 * bq*128*4
      out   : double-buffered, dense 128 lanes        -> 2 * bq*128*4
      temps : ~8 live (bq, 128)-ish f32/bf16 slabs    -> 8 * bq*128*4
      params: resident bf16 weights + f32 biases      -> ~0.1 MiB
    """
    return 12 * bq * _LANES * 4 + (128 << 10)


def _pick_bq(packed_rows, requested_bq):
    """Largest packed-row tile that fits the VMEM budget; multiple of 8 unless it
    spans the whole (possibly small) array; best-effort even grid for v7x."""
    bq = _round_up(max(8, requested_bq), 8)
    while bq > 8 and _vmem_bytes(bq) > _VMEM_BUDGET:
        bq //= 2
    if packed_rows <= bq:
        return packed_rows               # single full-extent block (always legal)
    nt = pl.cdiv(packed_rows, bq)
    if nt % 2:                           # even split across v7x's two TensorCores
        bq = max(8, _round_up(pl.cdiv(packed_rows, nt + 1), 8))
    return bq


def _mlp_kernel(x_ref,
                w1_ref, b1_ref,
                w2_ref, b2_ref,
                w3_ref, b3_ref,
                w4_ref, b4_ref,
                o_ref):
    """Fused 4-layer MLP on one packed batch tile.

    x_ref:  (bq, GROUP*F) f32  -- row j holds original rows 4j..4j+3.
    o_ref:  (bq, 128)     out  -- lanes [32g, 32g+32) hold original row 4j+g.
    """
    f = w1_ref.shape[0]
    groups = x_ref.shape[1] // f
    n_out = w4_ref.shape[1]

    # f32 -> bf16 cast happens here (in-kernel), not in the wrapper.
    xg = x_ref[...].astype(w1_ref.dtype)

    for g in range(groups):
        h = jnp.dot(xg[:, g * f:(g + 1) * f], w1_ref[...],
                    preferred_element_type=jnp.float32) + b1_ref[...]
        h = jnp.maximum(h, 0.0)                         # act1 (+ dropout1 = id)

        h = jnp.dot(h.astype(w2_ref.dtype), w2_ref[...],
                    preferred_element_type=jnp.float32) + b2_ref[...]
        h = jnp.maximum(h, 0.0)                         # act2 (+ dropout2 = id)

        h = jnp.dot(h.astype(w3_ref.dtype), w3_ref[...],
                    preferred_element_type=jnp.float32) + b3_ref[...]
        h = jnp.maximum(h, 0.0)                         # act3 (+ dropout3 = id)

        h = jnp.dot(h.astype(w4_ref.dtype), w4_ref[...],
                    preferred_element_type=jnp.float32) + b4_ref[...]
        h = jnp.maximum(h, 0.0)                         # act4 (+ dropout4 = id)

        o_ref[:, g * n_out:(g + 1) * n_out] = h.astype(o_ref.dtype)


@functools.partial(jax.jit, static_argnames=("batch_tile",))
def mlp_forward(x, params, batch_tile=8192):
    """x: (B, n_variables). params: transposed bf16 weights, (1, out) f32 biases."""
    B, F = x.shape
    out_dtype = x.dtype
    w1, b1 = params["w1"], params["b1"]   # (F, 128)  bf16, (1, 128) f32
    w2, b2 = params["w2"], params["b2"]   # (128,128) bf16, (1, 128) f32
    w3, b3 = params["w3"], params["b3"]   # (128, 64) bf16, (1,  64) f32
    w4, b4 = params["w4"], params["b4"]   # (64,  32) bf16, (1,  32) f32

    # Row-major byte-identical re-packing: (Bp, F) -> (Bp/4, 4F).  Only pads
    # (one extra pass over x) in the rare B % 4 != 0 case.
    Bp = _round_up(B, _GROUP)
    if Bp != B:
        x = jnp.pad(x, ((0, Bp - B), (0, 0)))
    packed_rows = Bp // _GROUP
    x2 = x.reshape(packed_rows, _GROUP * F)

    bq = _pick_bq(packed_rows, max(1, batch_tile // _GROUP))
    num_tiles = pl.cdiv(packed_rows, bq)

    # Weights / biases: full-array blocks, constant index map -> resident
    # across all grid steps (no re-DMA).
    full = lambda arr: pl.BlockSpec(arr.shape, lambda i: (0, 0))

    flops = 2 * Bp * (F * 128 + 128 * 128 + 128 * 64 + 64 * 32)
    param_bytes = sum(int(p.size) * p.dtype.itemsize
                      for p in (w1, b1, w2, b2, w3, b3, w4, b4))
    bytes_accessed = (Bp * F * x.dtype.itemsize
                      + Bp * _OUT_FEATURES * jnp.dtype(out_dtype).itemsize
                      + param_bytes)

    out_packed = pl.pallas_call(
        _mlp_kernel,
        out_shape=jax.ShapeDtypeStruct((packed_rows, _LANES), out_dtype),
        grid_spec=pltpu.PrefetchScalarGridSpec(
            num_scalar_prefetch=0,
            grid=(num_tiles,),
            in_specs=[
                pl.BlockSpec((bq, _GROUP * F), lambda i: (i, 0)),   # packed x tile
                full(w1), full(b1),
                full(w2), full(b2),
                full(w3), full(b3),
                full(w4), full(b4),
            ],
            out_specs=pl.BlockSpec((bq, _LANES), lambda i: (i, 0)), # lane-dense out
        ),
        compiler_params=pltpu.CompilerParams(
            dimension_semantics=("parallel",),
            vmem_limit_bytes=_VMEM_LIMIT),
        cost_estimate=pl.CostEstimate(
            flops=int(flops),
            transcendentals=0,
            bytes_accessed=int(bytes_accessed)),
    )(x2, w1, b1, w2, b2, w3, b3, w4, b4)

    # Byte-identical un-packing back to (B, 32).
    return out_packed.reshape(Bp, _OUT_FEATURES)[:B]


def init_params(key, n_variables):
    """Mirrors the PyTorch module's init.

    nn.Linear(in, out): weight (out, in), bias (out,).
    kaiming_uniform_(nonlinearity='relu'): bound = sqrt(2) * sqrt(3 / fan_in)
      (the module explicitly overrides the default weight init).
    default bias init: bound = 1 / sqrt(fan_in).
    Weights stored transposed (in, out) in bf16; biases as (1, out) f32.
    """
    dims = [(n_variables, 128), (128, 128), (128, 64), (64, 32)]
    params = {}
    for idx, (fan_in, fan_out) in enumerate(dims, start=1):
        key, kw, kb = jax.random.split(key, 3)
        w_bound = (2.0 ** 0.5) * (3.0 / fan_in) ** 0.5
        b_bound = 1.0 / (fan_in ** 0.5)
        w = jax.random.uniform(kw, (fan_out, fan_in), jnp.float32,
                               minval=-w_bound, maxval=w_bound)
        b = jax.random.uniform(kb, (fan_out,), jnp.float32,
                               minval=-b_bound, maxval=b_bound)
        params[f"w{idx}"] = jnp.asarray(w.T, dtype=jnp.bfloat16)   # (in, out)
        params[f"b{idx}"] = jnp.asarray(b.reshape(1, -1), jnp.float32)
    return params


def mlp_reference(x, params):
    """Pure-JAX reference mirroring the kernel's math exactly
    (bf16 matmul operands, f32 accumulation, f32 bias + ReLU)."""
    h = x.astype(jnp.float32)
    for i in range(1, 5):
        a = h.astype(jnp.bfloat16).astype(jnp.float32)
        w = params[f"w{i}"].astype(jnp.float32)
        h = jnp.dot(a, w, precision=jax.lax.Precision.HIGHEST) + params[f"b{i}"]
        h = jnp.maximum(h, 0.0)
    return h


if __name__ == "__main__":
    key = jax.random.PRNGKey(0)
    n_variables = 16
    kx, kp = jax.random.split(key)
    params = init_params(kp, n_variables)

    # 1) Default path: single tile, no padding (B % 4 == 0).
    batch = 200
    x = jax.random.normal(kx, (batch, n_variables), jnp.float32)
    out = jax.block_until_ready(mlp_forward(x, params))
    ref = mlp_reference(x, params)
    assert out.shape == (batch, 32), out.shape
    assert jnp.allclose(out, ref.astype(out.dtype), atol=2e-3, rtol=2e-3), \
        "mismatch vs reference (default path)"

    # 2) Multi-tile path with a ragged last block (50 packed rows, tiles of 16).
    out2 = jax.block_until_ready(mlp_forward(x, params, batch_tile=64))
    assert jnp.allclose(out2, ref.astype(out2.dtype), atol=2e-3, rtol=2e-3), \
        "mismatch vs reference (ragged multi-tile path)"

    # 3) B % 4 != 0 exercises the rare pad fallback.
    x3 = jax.random.normal(kx, (30, n_variables), jnp.float32)
    out3 = jax.block_until_ready(mlp_forward(x3, params))
    ref3 = mlp_reference(x3, params)
    assert out3.shape == (30, 32), out3.shape
    assert jnp.allclose(out3, ref3.astype(out3.dtype), atol=2e-3, rtol=2e-3), \
        "mismatch vs reference (pad path)"

    print("KERNEL_OK")
</pallas_src>

<mosaic_0001>
module attributes {stable_mosaic.version = 11 : i64} {
  func.func @_mlp_kernel(%arg0: i32, %arg1: memref<50x64xf32, #tpu.memory_space<vmem>>, %arg2: memref<16x128xbf16, #tpu.memory_space<vmem>>, %arg3: memref<1x128xf32, #tpu.memory_space<vmem>>, %arg4: memref<128x128xbf16, #tpu.memory_space<vmem>>, %arg5: memref<1x128xf32, #tpu.memory_space<vmem>>, %arg6: memref<128x64xbf16, #tpu.memory_space<vmem>>, %arg7: memref<1x64xf32, #tpu.memory_space<vmem>>, %arg8: memref<64x32xbf16, #tpu.memory_space<vmem>>, %arg9: memref<1x32xf32, #tpu.memory_space<vmem>>, %arg10: memref<50x128xf32, #tpu.memory_space<vmem>>) attributes {dimension_semantics = [#tpu.dimension_semantics<parallel>], iteration_bounds = array<i64: 1>, scalar_prefetch = 0 : i64, scratch_operands = 0 : i64, tpu.core_type = #tpu.core_type<tc>, window_params = [{transform_indices = @transform_0, window_bounds = array<i64: 50, 64>}, {pipeline_mode = #tpu.pipeline_mode<synchronous>, transform_indices = @transform_1, window_bounds = array<i64: 16, 128>}, {pipeline_mode = #tpu.pipeline_mode<synchronous>, transform_indices = @transform_2, window_bounds = array<i64: 1, 128>}, {pipeline_mode = #tpu.pipeline_mode<synchronous>, transform_indices = @transform_3, window_bounds = array<i64: 128, 128>}, {pipeline_mode = #tpu.pipeline_mode<synchronous>, transform_indices = @transform_4, window_bounds = array<i64: 1, 128>}, {pipeline_mode = #tpu.pipeline_mode<synchronous>, transform_indices = @transform_5, window_bounds = array<i64: 128, 64>}, {pipeline_mode = #tpu.pipeline_mode<synchronous>, transform_indices = @transform_6, window_bounds = array<i64: 1, 64>}, {pipeline_mode = #tpu.pipeline_mode<synchronous>, transform_indices = @transform_7, window_bounds = array<i64: 64, 32>}, {pipeline_mode = #tpu.pipeline_mode<synchronous>, transform_indices = @transform_8, window_bounds = array<i64: 1, 32>}, {transform_indices = @transform_9, window_bounds = array<i64: 50, 128>}]} {
    %c0 = arith.constant 0 : index
    %c0_0 = arith.constant 0 : index
    %0 = vector.load %arg1[%c0, %c0_0] : memref<50x64xf32, #tpu.memory_space<vmem>>, vector<50x64xf32>
    %1 = arith.truncf %0 : vector<50x64xf32> to vector<50x64xbf16>
    %2 = vector.extract_strided_slice %1 {offsets = [0, 0], sizes = [50, 16], strides = [1, 1]} : vector<50x64xbf16> to vector<50x16xbf16>
    %c0_1 = arith.constant 0 : index
    %c0_2 = arith.constant 0 : index
    %3 = vector.load %arg2[%c0_1, %c0_2] : memref<16x128xbf16, #tpu.memory_space<vmem>>, vector<16x128xbf16>
    %cst = arith.constant dense<0.000000e+00> : vector<50x128xf32>
    %4 = tpu.matmul %2, %3, %cst {dimension_numbers = #tpu.dot_dimension_numbers<[1], [0], [0], [1], [0, 0, 1, 1], [], []>} : vector<50x16xbf16>, vector<16x128xbf16>, vector<50x128xf32> -> vector<50x128xf32>
    %c0_3 = arith.constant 0 : index
    %c0_4 = arith.constant 0 : index
    %5 = vector.load %arg3[%c0_3, %c0_4] : memref<1x128xf32, #tpu.memory_space<vmem>>, vector<1x128xf32>
    %6 = vector.broadcast %5 : vector<1x128xf32> to vector<50x128xf32>
    %7 = arith.addf %4, %6 : vector<50x128xf32>
    %cst_5 = arith.constant 0.000000e+00 : f32
    %8 = vector.broadcast %cst_5 : f32 to vector<50x128xf32>
    %9 = arith.maximumf %7, %8 : vector<50x128xf32>
    %10 = arith.truncf %9 : vector<50x128xf32> to vector<50x128xbf16>
    %c0_6 = arith.constant 0 : index
    %c0_7 = arith.constant 0 : index
    %11 = vector.load %arg4[%c0_6, %c0_7] : memref<128x128xbf16, #tpu.memory_space<vmem>>, vector<128x128xbf16>
    %cst_8 = arith.constant dense<0.000000e+00> : vector<50x128xf32>
    %12 = tpu.matmul %10, %11, %cst_8 {dimension_numbers = #tpu.dot_dimension_numbers<[1], [0], [0], [1], [0, 0, 1, 1], [], []>} : vector<50x128xbf16>, vector<128x128xbf16>, vector<50x128xf32> -> vector<50x128xf32>
    %c0_9 = arith.constant 0 : index
    %c0_10 = arith.constant 0 : index
    %13 = vector.load %arg5[%c0_9, %c0_10] : memref<1x128xf32, #tpu.memory_space<vmem>>, vector<1x128xf32>
    %14 = vector.broadcast %13 : vector<1x128xf32> to vector<50x128xf32>
    %15 = arith.addf %12, %14 : vector<50x128xf32>
    %cst_11 = arith.constant 0.000000e+00 : f32
    %16 = vector.broadcast %cst_11 : f32 to vector<50x128xf32>
    %17 = arith.maximumf %15, %16 : vector<50x128xf32>
    %18 = arith.truncf %17 : vector<50x128xf32> to vector<50x128xbf16>
    %c0_12 = arith.constant 0 : index
    %c0_13 = arith.constant 0 : index
    %19 = vector.load %arg6[%c0_12, %c0_13] : memref<128x64xbf16, #tpu.memory_space<vmem>>, vector<128x64xbf16>
    %cst_14 = arith.constant dense<0.000000e+00> : vector<50x64xf32>
    %20 = tpu.matmul %18, %19, %cst_14 {dimension_numbers = #tpu.dot_dimension_numbers<[1], [0], [0], [1], [0, 0, 1, 1], [], []>} : vector<50x128xbf16>, vector<128x64xbf16>, vector<50x64xf32> -> vector<50x64xf32>
    %c0_15 = arith.constant 0 : index
    %c0_16 = arith.constant 0 : index
    %21 = vector.load %arg7[%c0_15, %c0_16] : memref<1x64xf32, #tpu.memory_space<vmem>>, vector<1x64xf32>
    %22 = vector.broadcast %21 : vector<1x64xf32> to vector<50x64xf32>
    %23 = arith.addf %20, %22 : vector<50x64xf32>
    %cst_17 = arith.constant 0.000000e+00 : f32
    %24 = vector.broadcast %cst_17 : f32 to vector<50x64xf32>
    %25 = arith.maximumf %23, %24 : vector<50x64xf32>
    %26 = arith.truncf %25 : vector<50x64xf32> to vector<50x64xbf16>
    %c0_18 = arith.constant 0 : index
    %c0_19 = arith.constant 0 : index
    %27 = vector.load %arg8[%c0_18, %c0_19] : memref<64x32xbf16, #tpu.memory_space<vmem>>, vector<64x32xbf16>
    %cst_20 = arith.constant dense<0.000000e+00> : vector<50x32xf32>
    %28 = tpu.matmul %26, %27, %cst_20 {dimension_numbers = #tpu.dot_dimension_numbers<[1], [0], [0], [1], [0, 0, 1, 1], [], []>} : vector<50x64xbf16>, vector<64x32xbf16>, vector<50x32xf32> -> vector<50x32xf32>
    %c0_21 = arith.constant 0 : index
    %c0_22 = arith.constant 0 : index
    %29 = vector.load %arg9[%c0_21, %c0_22] : memref<1x32xf32, #tpu.memory_space<vmem>>, vector<1x32xf32>
    %30 = vector.broadcast %29 : vector<1x32xf32> to vector<50x32xf32>
    %31 = arith.addf %28, %30 : vector<50x32xf32>
    %cst_23 = arith.constant 0.000000e+00 : f32
    %32 = vector.broadcast %cst_23 : f32 to vector<50x32xf32>
    %33 = arith.maximumf %31, %32 : vector<50x32xf32>
    %c0_24 = arith.constant 0 : index
    %c0_25 = arith.constant 0 : index
    %34 = vector.load %arg10[%c0_24, %c0_25] : memref<50x128xf32, #tpu.memory_space<vmem>>, vector<50x32xf32>
    tpu.vector_store %arg10[%c0_24, %c0_25], %33 {strides = array<i32>} : memref<50x128xf32, #tpu.memory_space<vmem>>, vector<50x32xf32>,
    %35 = vector.extract_strided_slice %1 {offsets = [0, 16], sizes = [50, 16], strides = [1, 1]} : vector<50x64xbf16> to vector<50x16xbf16>
    %c0_26 = arith.constant 0 : index
    %c0_27 = arith.constant 0 : index
    %36 = vector.load %arg2[%c0_26, %c0_27] : memref<16x128xbf16, #tpu.memory_space<vmem>>, vector<16x128xbf16>
    %cst_28 = arith.constant dense<0.000000e+00> : vector<50x128xf32>
    %37 = tpu.matmul %35, %36, %cst_28 {dimension_numbers = #tpu.dot_dimension_numbers<[1], [0], [0], [1], [0, 0, 1, 1], [], []>} : vector<50x16xbf16>, vector<16x128xbf16>, vector<50x128xf32> -> vector<50x128xf32>
    %c0_29 = arith.constant 0 : index
    %c0_30 = arith.constant 0 : index
    %38 = vector.load %arg3[%c0_29, %c0_30] : memref<1x128xf32, #tpu.memory_space<vmem>>, vector<1x128xf32>
    %39 = vector.broadcast %38 : vector<1x128xf32> to vector<50x128xf32>
    %40 = arith.addf %37, %39 : vector<50x128xf32>
    %cst_31 = arith.constant 0.000000e+00 : f32
    %41 = vector.broadcast %cst_31 : f32 to vector<50x128xf32>
    %42 = arith.maximumf %40, %41 : vector<50x128xf32>
    %43 = arith.truncf %42 : vector<50x128xf32> to vector<50x128xbf16>
    %c0_32 = arith.constant 0 : index
    %c0_33 = arith.constant 0 : index
    %44 = vector.load %arg4[%c0_32, %c0_33] : memref<128x128xbf16, #tpu.memory_space<vmem>>, vector<128x128xbf16>
    %cst_34 = arith.constant dense<0.000000e+00> : vector<50x128xf32>
    %45 = tpu.matmul %43, %44, %cst_34 {dimension_numbers = #tpu.dot_dimension_numbers<[1], [0], [0], [1], [0, 0, 1, 1], [], []>} : vector<50x128xbf16>, vector<128x128xbf16>, vector<50x128xf32> -> vector<50x128xf32>
    %c0_35 = arith.constant 0 : index
    %c0_36 = arith.constant 0 : index
    %46 = vector.load %arg5[%c0_35, %c0_36] : memref<1x128xf32, #tpu.memory_space<vmem>>, vector<1x128xf32>
    %47 = vector.broadcast %46 : vector<1x128xf32> to vector<50x128xf32>
    %48 = arith.addf %45, %47 : vector<50x128xf32>
    %cst_37 = arith.constant 0.000000e+00 : f32
    %49 = vector.broadcast %cst_37 : f32 to vector<50x128xf32>
    %50 = arith.maximumf %48, %49 : vector<50x128xf32>
    %51 = arith.truncf %50 : vector<50x128xf32> to vector<50x128xbf16>
    %c0_38 = arith.constant 0 : index
    %c0_39 = arith.constant 0 : index
    %52 = vector.load %arg6[%c0_38, %c0_39] : memref<128x64xbf16, #tpu.memory_space<vmem>>, vector<128x64xbf16>
    %cst_40 = arith.constant dense<0.000000e+00> : vector<50x64xf32>
    %53 = tpu.matmul %51, %52, %cst_40 {dimension_numbers = #tpu.dot_dimension_numbers<[1], [0], [0], [1], [0, 0, 1, 1], [], []>} : vector<50x128xbf16>, vector<128x64xbf16>, vector<50x64xf32> -> vector<50x64xf32>
    %c0_41 = arith.constant 0 : index
    %c0_42 = arith.constant 0 : index
    %54 = vector.load %arg7[%c0_41, %c0_42] : memref<1x64xf32, #tpu.memory_space<vmem>>, vector<1x64xf32>
    %55 = vector.broadcast %54 : vector<1x64xf32> to vector<50x64xf32>
    %56 = arith.addf %53, %55 : vector<50x64xf32>
    %cst_43 = arith.constant 0.000000e+00 : f32
    %57 = vector.broadcast %cst_43 : f32 to vector<50x64xf32>
    %58 = arith.maximumf %56, %57 : vector<50x64xf32>
    %59 = arith.truncf %58 : vector<50x64xf32> to vector<50x64xbf16>
    %c0_44 = arith.constant 0 : index
    %c0_45 = arith.constant 0 : index
    %60 = vector.load %arg8[%c0_44, %c0_45] : memref<64x32xbf16, #tpu.memory_space<vmem>>, vector<64x32xbf16>
    %cst_46 = arith.constant dense<0.000000e+00> : vector<50x32xf32>
    %61 = tpu.matmul %59, %60, %cst_46 {dimension_numbers = #tpu.dot_dimension_numbers<[1], [0], [0], [1], [0, 0, 1, 1], [], []>} : vector<50x64xbf16>, vector<64x32xbf16>, vector<50x32xf32> -> vector<50x32xf32>
    %c0_47 = arith.constant 0 : index
    %c0_48 = arith.constant 0 : index
    %62 = vector.load %arg9[%c0_47, %c0_48] : memref<1x32xf32, #tpu.memory_space<vmem>>, vector<1x32xf32>
    %63 = vector.broadcast %62 : vector<1x32xf32> to vector<50x32xf32>
    %64 = arith.addf %61, %63 : vector<50x32xf32>
    %cst_49 = arith.constant 0.000000e+00 : f32
    %65 = vector.broadcast %cst_49 : f32 to vector<50x32xf32>
    %66 = arith.maximumf %64, %65 : vector<50x32xf32>
    %c0_50 = arith.constant 0 : index
    %c32 = arith.constant 32 : index
    %67 = vector.load %arg10[%c0_50, %c32] : memref<50x128xf32, #tpu.memory_space<vmem>>, vector<50x32xf32>
    tpu.vector_store %arg10[%c0_50, %c32], %66 {strides = array<i32>} : memref<50x128xf32, #tpu.memory_space<vmem>>, vector<50x32xf32>,
    %68 = vector.extract_strided_slice %1 {offsets = [0, 32], sizes = [50, 16], strides = [1, 1]} : vector<50x64xbf16> to vector<50x16xbf16>
    %c0_51 = arith.constant 0 : index
    %c0_52 = arith.constant 0 : index
    %69 = vector.load %arg2[%c0_51, %c0_52] : memref<16x128xbf16, #tpu.memory_space<vmem>>, vector<16x128xbf16>
    %cst_53 = arith.constant dense<0.000000e+00> : vector<50x128xf32>
    %70 = tpu.matmul %68, %69, %cst_53 {dimension_numbers = #tpu.dot_dimension_numbers<[1], [0], [0], [1], [0, 0, 1, 1], [], []>} : vector<50x16xbf16>, vector<16x128xbf16>, vector<50x128xf32> -> vector<50x128xf32>
    %c0_54 = arith.constant 0 : index
    %c0_55 = arith.constant 0 : index
    %71 = vector.load %arg3[%c0_54, %c0_55] : memref<1x128xf32, #tpu.memory_space<vmem>>, vector<1x128xf32>
    %72 = vector.broadcast %71 : vector<1x128xf32> to vector<50x128xf32>
    %73 = arith.addf %70, %72 : vector<50x128xf32>
    %cst_56 = arith.constant 0.000000e+00 : f32
    %74 = vector.broadcast %cst_56 : f32 to vector<50x128xf32>
    %75 = arith.maximumf %73, %74 : vector<50x128xf32>
    %76 = arith.truncf %75 : vector<50x128xf32> to vector<50x128xbf16>
    %c0_57 = arith.constant 0 : index
    %c0_58 = arith.constant 0 : index
    %77 = vector.load %arg4[%c0_57, %c0_58] : memref<128x128xbf16, #tpu.memory_space<vmem>>, vector<128x128xbf16>
    %cst_59 = arith.constant dense<0.000000e+00> : vector<50x128xf32>
    %78 = tpu.matmul %76, %77, %cst_59 {dimension_numbers = #tpu.dot_dimension_numbers<[1], [0], [0], [1], [0, 0, 1, 1], [], []>} : vector<50x128xbf16>, vector<128x128xbf16>, vector<50x128xf32> -> vector<50x128xf32>
    %c0_60 = arith.constant 0 : index
    %c0_61 = arith.constant 0 : index
    %79 = vector.load %arg5[%c0_60, %c0_61] : memref<1x128xf32, #tpu.memory_space<vmem>>, vector<1x128xf32>
    %80 = vector.broadcast %79 : vector<1x128xf32> to vector<50x128xf32>
    %81 = arith.addf %78, %80 : vector<50x128xf32>
    %cst_62 = arith.constant 0.000000e+00 : f32
    %82 = vector.broadcast %cst_62 : f32 to vector<50x128xf32>
    %83 = arith.maximumf %81, %82 : vector<50x128xf32>
    %84 = arith.truncf %83 : vector<50x128xf32> to vector<50x128xbf16>
    %c0_63 = arith.constant 0 : index
    %c0_64 = arith.constant 0 : index
    %85 = vector.load %arg6[%c0_63, %c0_64] : memref<128x64xbf16, #tpu.memory_space<vmem>>, vector<128x64xbf16>
    %cst_65 = arith.constant dense<0.000000e+00> : vector<50x64xf32>
    %86 = tpu.matmul %84, %85, %cst_65 {dimension_numbers = #tpu.dot_dimension_numbers<[1], [0], [0], [1], [0, 0, 1, 1], [], []>} : vector<50x128xbf16>, vector<128x64xbf16>, vector<50x64xf32> -> vector<50x64xf32>
    %c0_66 = arith.constant 0 : index
    %c0_67 = arith.constant 0 : index
    %87 = vector.load %arg7[%c0_66, %c0_67] : memref<1x64xf32, #tpu.memory_space<vmem>>, vector<1x64xf32>
    %88 = vector.broadcast %87 : vector<1x64xf32> to vector<50x64xf32>
    %89 = arith.addf %86, %88 : vector<50x64xf32>
    %cst_68 = arith.constant 0.000000e+00 : f32
    %90 = vector.broadcast %cst_68 : f32 to vector<50x64xf32>
    %91 = arith.maximumf %89, %90 : vector<50x64xf32>
    %92 = arith.truncf %91 : vector<50x64xf32> to vector<50x64xbf16>
    %c0_69 = arith.constant 0 : index
    %c0_70 = arith.constant 0 : index
    %93 = vector.load %arg8[%c0_69, %c0_70] : memref<64x32xbf16, #tpu.memory_space<vmem>>, vector<64x32xbf16>
    %cst_71 = arith.constant dense<0.000000e+00> : vector<50x32xf32>
    %94 = tpu.matmul %92, %93, %cst_71 {dimension_numbers = #tpu.dot_dimension_numbers<[1], [0], [0], [1], [0, 0, 1, 1], [], []>} : vector<50x64xbf16>, vector<64x32xbf16>, vector<50x32xf32> -> vector<50x32xf32>
    %c0_72 = arith.constant 0 : index
    %c0_73 = arith.constant 0 : index
    %95 = vector.load %arg9[%c0_72, %c0_73] : memref<1x32xf32, #tpu.memory_space<vmem>>, vector<1x32xf32>
    %96 = vector.broadcast %95 : vector<1x32xf32> to vector<50x32xf32>
    %97 = arith.addf %94, %96 : vector<50x32xf32>
    %cst_74 = arith.constant 0.000000e+00 : f32
    %98 = vector.broadcast %cst_74 : f32 to vector<50x32xf32>
    %99 = arith.maximumf %97, %98 : vector<50x32xf32>
    %c0_75 = arith.constant 0 : index
    %c64 = arith.constant 64 : index
    %100 = vector.load %arg10[%c0_75, %c64] : memref<50x128xf32, #tpu.memory_space<vmem>>, vector<50x32xf32>
    tpu.vector_store %arg10[%c0_75, %c64], %99 {strides = array<i32>} : memref<50x128xf32, #tpu.memory_space<vmem>>, vector<50x32xf32>,
    %101 = vector.extract_strided_slice %1 {offsets = [0, 48], sizes = [50, 16], strides = [1, 1]} : vector<50x64xbf16> to vector<50x16xbf16>
    %c0_76 = arith.constant 0 : index
    %c0_77 = arith.constant 0 : index
    %102 = vector.load %arg2[%c0_76, %c0_77] : memref<16x128xbf16, #tpu.memory_space<vmem>>, vector<16x128xbf16>
    %cst_78 = arith.constant dense<0.000000e+00> : vector<50x128xf32>
    %103 = tpu.matmul %101, %102, %cst_78 {dimension_numbers = #tpu.dot_dimension_numbers<[1], [0], [0], [1], [0, 0, 1, 1], [], []>} : vector<50x16xbf16>, vector<16x128xbf16>, vector<50x128xf32> -> vector<50x128xf32>
    %c0_79 = arith.constant 0 : index
    %c0_80 = arith.constant 0 : index
    %104 = vector.load %arg3[%c0_79, %c0_80] : memref<1x128xf32, #tpu.memory_space<vmem>>, vector<1x128xf32>
    %105 = vector.broadcast %104 : vector<1x128xf32> to vector<50x128xf32>
    %106 = arith.addf %103, %105 : vector<50x128xf32>
    %cst_81 = arith.constant 0.000000e+00 : f32
    %107 = vector.broadcast %cst_81 : f32 to vector<50x128xf32>
    %108 = arith.maximumf %106, %107 : vector<50x128xf32>
    %109 = arith.truncf %108 : vector<50x128xf32> to vector<50x128xbf16>
    %c0_82 = arith.constant 0 : index
    %c0_83 = arith.constant 0 : index
    %110 = vector.load %arg4[%c0_82, %c0_83] : memref<128x128xbf16, #tpu.memory_space<vmem>>, vector<128x128xbf16>
    %cst_84 = arith.constant dense<0.000000e+00> : vector<50x128xf32>
    %111 = tpu.matmul %109, %110, %cst_84 {dimension_numbers = #tpu.dot_dimension_numbers<[1], [0], [0], [1], [0, 0, 1, 1], [], []>} : vector<50x128xbf16>, vector<128x128xbf16>, vector<50x128xf32> -> vector<50x128xf32>
    %c0_85 = arith.constant 0 : index
    %c0_86 = arith.constant 0 : index
    %112 = vector.load %arg5[%c0_85, %c0_86] : memref<1x128xf32, #tpu.memory_space<vmem>>, vector<1x128xf32>
    %113 = vector.broadcast %112 : vector<1x128xf32> to vector<50x128xf32>
    %114 = arith.addf %111, %113 : vector<50x128xf32>
    %cst_87 = arith.constant 0.000000e+00 : f32
    %115 = vector.broadcast %cst_87 : f32 to vector<50x128xf32>
    %116 = arith.maximumf %114, %115 : vector<50x128xf32>
    %117 = arith.truncf %116 : vector<50x128xf32> to vector<50x128xbf16>
    %c0_88 = arith.constant 0 : index
    %c0_89 = arith.constant 0 : index
    %118 = vector.load %arg6[%c0_88, %c0_89] : memref<128x64xbf16, #tpu.memory_space<vmem>>, vector<128x64xbf16>
    %cst_90 = arith.constant dense<0.000000e+00> : vector<50x64xf32>
    %119 = tpu.matmul %117, %118, %cst_90 {dimension_numbers = #tpu.dot_dimension_numbers<[1], [0], [0], [1], [0, 0, 1, 1], [], []>} : vector<50x128xbf16>, vector<128x64xbf16>, vector<50x64xf32> -> vector<50x64xf32>
    %c0_91 = arith.constant 0 : index
    %c0_92 = arith.constant 0 : index
    %120 = vector.load %arg7[%c0_91, %c0_92] : memref<1x64xf32, #tpu.memory_space<vmem>>, vector<1x64xf32>
    %121 = vector.broadcast %120 : vector<1x64xf32> to vector<50x64xf32>
    %122 = arith.addf %119, %121 : vector<50x64xf32>
    %cst_93 = arith.constant 0.000000e+00 : f32
    %123 = vector.broadcast %cst_93 : f32 to vector<50x64xf32>
    %124 = arith.maximumf %122, %123 : vector<50x64xf32>
    %125 = arith.truncf %124 : vector<50x64xf32> to vector<50x64xbf16>
    %c0_94 = arith.constant 0 : index
    %c0_95 = arith.constant 0 : index
    %126 = vector.load %arg8[%c0_94, %c0_95] : memref<64x32xbf16, #tpu.memory_space<vmem>>, vector<64x32xbf16>
    %cst_96 = arith.constant dense<0.000000e+00> : vector<50x32xf32>
    %127 = tpu.matmul %125, %126, %cst_96 {dimension_numbers = #tpu.dot_dimension_numbers<[1], [0], [0], [1], [0, 0, 1, 1], [], []>} : vector<50x64xbf16>, vector<64x32xbf16>, vector<50x32xf32> -> vector<50x32xf32>
    %c0_97 = arith.constant 0 : index
    %c0_98 = arith.constant 0 : index
    %128 = vector.load %arg9[%c0_97, %c0_98] : memref<1x32xf32, #tpu.memory_space<vmem>>, vector<1x32xf32>
    %129 = vector.broadcast %128 : vector<1x32xf32> to vector<50x32xf32>
    %130 = arith.addf %127, %129 : vector<50x32xf32>
    %cst_99 = arith.constant 0.000000e+00 : f32
    %131 = vector.broadcast %cst_99 : f32 to vector<50x32xf32>
    %132 = arith.maximumf %130, %131 : vector<50x32xf32>
    %c0_100 = arith.constant 0 : index
    %c96 = arith.constant 96 : index
    %133 = vector.load %arg10[%c0_100, %c96] : memref<50x128xf32, #tpu.memory_space<vmem>>, vector<50x32xf32>
    tpu.vector_store %arg10[%c0_100, %c96], %132 {strides = array<i32>} : memref<50x128xf32, #tpu.memory_space<vmem>>, vector<50x32xf32>,
    return
  }
  func.func @transform_0(%arg0: i32) -> (i32, i32) {
    %c0_i32 = arith.constant 0 : i32
    %c0_i32_0 = arith.constant 0 : i32
    return %arg0, %c0_i32 : i32, i32
  }
  func.func @transform_1(%arg0: i32) -> (i32, i32) {
    %c0_i32 = arith.constant 0 : i32
    %c0_i32_0 = arith.constant 0 : i32
    %c0_i32_1 = arith.constant 0 : i32
    return %c0_i32, %c0_i32_0 : i32, i32
  }
  func.func @transform_2(%arg0: i32) -> (i32, i32) {
    %c0_i32 = arith.constant 0 : i32
    %c0_i32_0 = arith.constant 0 : i32
    %c0_i32_1 = arith.constant 0 : i32
    return %c0_i32, %c0_i32_0 : i32, i32
  }
  func.func @transform_3(%arg0: i32) -> (i32, i32) {
    %c0_i32 = arith.constant 0 : i32
    %c0_i32_0 = arith.constant 0 : i32
    %c0_i32_1 = arith.constant 0 : i32
    return %c0_i32, %c0_i32_0 : i32, i32
  }
  func.func @transform_4(%arg0: i32) -> (i32, i32) {
    %c0_i32 = arith.constant 0 : i32
    %c0_i32_0 = arith.constant 0 : i32
    %c0_i32_1 = arith.constant 0 : i32
    return %c0_i32, %c0_i32_0 : i32, i32
  }
  func.func @transform_5(%arg0: i32) -> (i32, i32) {
    %c0_i32 = arith.constant 0 : i32
    %c0_i32_0 = arith.constant 0 : i32
    %c0_i32_1 = arith.constant 0 : i32
    return %c0_i32, %c0_i32_0 : i32, i32
  }
  func.func @transform_6(%arg0: i32) -> (i32, i32) {
    %c0_i32 = arith.constant 0 : i32
    %c0_i32_0 = arith.constant 0 : i32
    %c0_i32_1 = arith.constant 0 : i32
    return %c0_i32, %c0_i32_0 : i32, i32
  }
  func.func @transform_7(%arg0: i32) -> (i32, i32) {
    %c0_i32 = arith.constant 0 : i32
    %c0_i32_0 = arith.constant 0 : i32
    %c0_i32_1 = arith.constant 0 : i32
    return %c0_i32, %c0_i32_0 : i32, i32
  }
  func.func @transform_8(%arg0: i32) -> (i32, i32) {
    %c0_i32 = arith.constant 0 : i32
    %c0_i32_0 = arith.constant 0 : i32
    %c0_i32_1 = arith.constant 0 : i32
    return %c0_i32, %c0_i32_0 : i32, i32
  }
  func.func @transform_9(%arg0: i32) -> (i32, i32) {
    %c0_i32 = arith.constant 0 : i32
    %c0_i32_0 = arith.constant 0 : i32
    return %arg0, %c0_i32 : i32, i32
  }
}

</mosaic_0001>

<bundles_post_ra>
// kernel: mlp_forward.1
= control target key start
LH: loop header
LB: loop body
LE: loop exit
PB: predicated region body
PF: predicated region fallthrough
CT: control target
= control target key end

     0   :  { %vm59_vm0 = vcmask 130048   ;;  %s2935_s19 = smov 112   ;;  %s2936_s30 = smov 96   ;;  %vm478_vm1 = vcmask 523264   ;;  %vm562_vm2 = vcmask 261120   ;;  %vm569_vm3 = vcmask 254976   ;;  %s3556_s1 = inlined_call_operand.vmem [shape: bf16[16,128], index: 1, kind: input, shape index: {}]   ;;  %s3557_s0 = inlined_call_operand.vmem [shape: f32[50,64], index: 0, kind: input, shape index: {}]   ;;  %s3558_s3 = inlined_call_operand.vmem [shape: bf16[128,128], index: 3, kind: input, shape index: {}]   ;;  %s3559_s5 = inlined_call_operand.vmem [shape: bf16[128,64], index: 5, kind: input, shape index: {}]   ;;  %s3560_s2 = inlined_call_operand.vmem [shape: f32[1,128], index: 2, kind: input, shape index: {}]   ;;  %s3561_s7 = inlined_call_operand.vmem [shape: bf16[64,32], index: 7, kind: input, shape index: {}]   ;;  %s3562_s4 = inlined_call_operand.vmem [shape: f32[1,128], index: 4, kind: input, shape index: {}]   ;;  %s3563_s6 = inlined_call_operand.vmem [shape: f32[1,64], index: 6, kind: input, shape index: {}]   ;;  %s3564_s8 = inlined_call_operand.vmem [shape: f32[1,32], index: 8, kind: input, shape index: {}]   ;;  %s3565_s9 = inlined_call_operand.vmem [shape: f32[50,128], index: 9, kind: output, shape index: {}]  }
   0x1   :  { %v2851_v0 = vld [vmem:[%s3556_s1] sm:$0xff]   ;;  %v34_v2 = vld [vmem:[%s3557_s0 + $0x8] sm:$0xff]  ;;  %v35_v3 = vld [vmem:[%s3557_s0 + $0x10] sm:$0xff]  ;;  %s2937_s27 = smov 80   ;;  %s2938_s21 = smov 32   ;;  %vm1127_vm4 = vcmask 523520  }
   0x2   :  { %v33_v1 = vld [vmem:[%s3557_s0] sm:$0xff]  ;;  %2542 = vmatprep.subr.bf16.mxu0 %v2851_v0  ;;  %v36_v5 = vld [vmem:[%s3557_s0 + $0x18] sm:$0xff]  ;;  %v38_v7 = vld [vmem:[%s3557_s0 + $0x28] sm:$0xff]  ;;  %vm1134_vm5 = vcmask 517376   ;;  %vm1688_vm6 = vcmask 785920   ;;  %vm1695_vm7 = vcmask 779776  }
   0x3   :  { %v3002_v4 = vpack.c.bf16 %v34_v2, %v33_v1  ;;  %v37_v6 = vld [vmem:[%s3557_s0 + $0x20] sm:$0xff]  ;;  %2543 = vmatpush3.bf16.msra.mxu0 %v2851_v0  ;;  %v3013_v8 = vpack.c.bf16 %v36_v5, %v35_v3  ;;  %v2853_v11 = vld [vmem:[%s3558_s3 + $0x8] sm:$0xff]   ;;  %v39_v12 = vld [vmem:[%s3557_s0 + $0x30] sm:$0x3]  ;;  %vm2249_vm8 = vcmask 1048320   ;;  %vm2256_vm9 = vcmask 1042176  }
   0x4   :  { %v3015_v9 = vpack.c.bf16 %v38_v7, %v37_v6  ;;  %v2852_v10 = vld [vmem:[%s3558_s3] sm:$0xff]   ;;  %v2854_v13 = vld [vmem:[%s3558_s3 + $0x10] sm:$0xff]   ;;  %v3035_v14 = vpack.c.bf16 %v39_v12, %v39_v12  ;;  %v2855_v15 = vld [vmem:[%s3558_s3 + $0x18] sm:$0xff]  }
   0x5   :  { %2544 = vmatprep.mubr.msk.bf16.mxu0 %vm59_vm0, %v3002_v4  ;;  %2552 = vmatprep.subr.bf16.mxu1 %v2852_v10  ;;  %v2856_v16 = vld [vmem:[%s3558_s3 + $0x20] sm:$0xff]   ;;  %v2857_v17 = vld [vmem:[%s3558_s3 + $0x28] sm:$0xff]   ;;  %v2858_v18 = vld [vmem:[%s3558_s3 + $0x30] sm:$0xff]  }
   0x6   :  { %2545 = vmatmul.mubr.msk.bf16.vlgmr.msra.gmra.mrb[0].mxu0 %vm59_vm0, %v3013_v8  ;;  %2553 = vmatpush3.bf16.msra.mxu1 %v2852_v10  ;;  %v2859_v19 = vld [vmem:[%s3558_s3 + $0x38] sm:$0xff]   ;;  %v2860_v20 = vld [vmem:[%s3559_s5] sm:$0xff]   ;;  %v2861_v21 = vld [vmem:[%s3559_s5 + $0x8] sm:$0xff]  }
   0x7   :  { %2548 = vmatprep.mubr.msk.bf16.mxu0 %vm59_vm0, %v3015_v9  ;;  %2554 = vmatprep.subr.bf16.mxu1 %v2853_v11  ;;  %v2862_v22 = vld [vmem:[%s3559_s5 + $0x10] sm:$0xff]   ;;  %v2863_v23 = vld [vmem:[%s3559_s5 + $0x18] sm:$0xff]   ;;  %v2864_v24 = vld [vmem:[%s3559_s5 + $0x20] sm:$0xff]  }
   0x8   :  { %584 = vrot.lane.b32.xlu0 %v3002_v4, %s2935_s19  ;;  %588 = vrot.lane.b32.xlu1 %v3015_v9, %s2935_s19  ;;  %v2865_v25 = vld [vmem:[%s3559_s5 + $0x28] sm:$0xff]   ;;  %v3079_v26 = vld [vmem:[%s3560_s2] ss:$0 sm:$0xff] }
   0x9   :  { %2576 = vmatprep.subr.bf16.mxu0 %v2860_v20  ;;  %v2866_v53 = vld [vmem:[%s3559_s5 + $0x30] sm:$0xff]   ;;  %v2867_v54 = vld [vmem:[%s3559_s5 + $0x38] sm:$0xff]   ;;  %v2868_v55 = vld [vmem:[%s3556_s1] sm:$0xff]  }
   0xa   :  { %2555 = vmatpush3.bf16.msra.mxu1 %v2853_v11  ;;  %2577 = vmatpush3.bf16.msra.mxu0 %v2860_v20  ;;  %v2869_v56 = vld [vmem:[%s3561_s7] sm:$0xff]   ;;  %v2870_v57 = vld [vmem:[%s3561_s7 + $0x8] sm:$0xff]  }
   0xb   :  { %2556 = vmatprep.subr.bf16.mxu1 %v2854_v13  ;;  %2578 = vmatprep.subr.bf16.mxu0 %v2861_v21  ;;  %v3106_v58 = vld [vmem:[%s3562_s4] ss:$0 sm:$0xff] }
   0xc   :  { %586 = vrot.lane.b32.xlu0 %v3013_v8, %s2935_s19  ;;  %590 = vrot.lane.b32.xlu1 %v3035_v14, %s2935_s19 }
   0xe   :  { %2549 = vmatmul.mubr.msk.bf16.gmra.mrb[4].mxu0 %vm59_vm0, %v3035_v14  ;;  %2557 = vmatpush3.bf16.msra.mxu1 %v2854_v13 }
   0xf   :  { %2558 = vmatprep.subr.bf16.mxu1 %v2855_v15  ;;  %2579 = vmatpush3.bf16.msra.mxu0 %v2861_v21 }
  0x10   :  { %2580 = vmatprep.subr.bf16.mxu0 %v2862_v22  ;;  %1145 = vrot.lane.b32.xlu0 %v3002_v4, %s2936_s30 }
  0x11   :  { %1147 = vrot.lane.b32.xlu1 %v3013_v8, %s2936_s30 }
  0x12   :  { %2559 = vmatpush3.bf16.msra.mxu1 %v2855_v15 }
  0x13   :  { %2560 = vmatprep.subr.bf16.mxu1 %v2856_v16  ;;  %2581 = vmatpush3.bf16.msra.mxu0 %v2862_v22 }
  0x14   :  { %2582 = vmatprep.subr.bf16.mxu0 %v2863_v23  ;;  %1149 = vrot.lane.b32.xlu0 %v3015_v9, %s2936_s30 }
  0x15   :  { %1151 = vrot.lane.b32.xlu1 %v3035_v14, %s2936_s30 }
  0x16   :  { %2561 = vmatpush3.bf16.msra.mxu1 %v2856_v16 }
  0x17   :  { %2562 = vmatprep.subr.bf16.mxu1 %v2857_v17  ;;  %2583 = vmatpush3.bf16.msra.mxu0 %v2863_v23 }
  0x18   :  { %2584 = vmatprep.subr.bf16.mxu0 %v2864_v24  ;;  %1706 = vrot.lane.b32.xlu0 %v3002_v4, %s2937_s27 }
  0x19   :  { %1708 = vrot.lane.b32.xlu1 %v3013_v8, %s2937_s27 }
  0x1a   :  { %2563 = vmatpush3.bf16.msra.mxu1 %v2857_v17 }
  0x1b   :  { %2564 = vmatprep.subr.bf16.mxu1 %v2858_v18  ;;  %2585 = vmatpush3.bf16.msra.mxu0 %v2864_v24 }
  0x1c   :  { %2586 = vmatprep.subr.bf16.mxu0 %v2865_v25  ;;  %1710 = vrot.lane.b32.xlu0 %v3015_v9, %s2937_s27 }
  0x1d   :  { %1712 = vrot.lane.b32.xlu1 %v3035_v14, %s2937_s27 }
  0x1e   :  { %2565 = vmatpush3.bf16.msra.mxu1 %v2858_v18 }
  0x1f   :  { %2566 = vmatprep.subr.bf16.mxu1 %v2859_v19  ;;  %2587 = vmatpush3.bf16.msra.mxu0 %v2865_v25 }
  0x20   :  { %2588 = vmatprep.subr.bf16.mxu0 %v2866_v53 }
  0x22   :  { %2567 = vmatpush3.bf16.msra.mxu1 %v2859_v19 }
  0x23   :  { %2589 = vmatpush3.bf16.msra.mxu0 %v2866_v53  ;;  %2600 = vmatprep.subr.bf16.mxu1 %v2869_v56 }
  0x24   :  { %2590 = vmatprep.subr.bf16.mxu0 %v2867_v54 }
  0x27   :  { %2591 = vmatpush3.bf16.msra.mxu0 %v2867_v54 }
  0x28   :  { %2616 = vmatprep.subr.bf16.mxu0 %v2868_v55 }
  0x7a   :  { %v585_v25 = vpop.permute.xlu0 %584 }
  0xd9   :  { %v2546_v27 = vpop.f32.mrb[0].mxu0 }
  0xda   :  { %v115_v28 = vadd.f32 %v2546_v27, %v3079_v26  ;;  %v106_v29 = vpop.f32.mrb[1].mxu0  ;;  %v587_v27 = vpop.permute.xlu0 %586 }
  0xdb   :  { %v107_v30 = vadd.f32 %v3079_v26, %v106_v29  ;;  %v2547_v31 = vpop.f32.mrb[2].mxu0 }
  0xdc   :  { %v118_v32 = vadd.f32 %v2547_v31, %v3079_v26  ;;  %v109_v33 = vpop.f32.mrb[3].mxu0  ;;  %v138_v35 = vmax.f32 %v115_v28, 0.0  ;;  %v589_v28 = vpop.permute.xlu1 %588  ;;  %v2872_v31 = vld [vmem:[%s3561_s7 + $0x18] sm:$0xff]  }
  0xdd   :  { %v110_v34 = vadd.f32 %v3079_v26, %v109_v33  ;;  %v136_v37 = vmax.f32 %v107_v30, 0.0  ;;  %v2871_v30 = vld [vmem:[%s3561_s7 + $0x10] sm:$0xff]   ;;  %v3139_v33 = vld [vmem:[%s3563_s6] ss:$0 sm:$0xff] }
  0xde   :  { %v139_v36 = vmax.f32 %v118_v32, 0.0  ;;  %v2873_v32 = vld [vmem:[%s3558_s3] sm:$0xff]  }
  0xdf   :  { %v137_v38 = vmax.f32 %v110_v34, 0.0 }
  0xe0   :  { %v144_v39 = vpack.c.bf16 %v139_v36, %v138_v35  ;;  %v591_v29 = vpop.permute.xlu1 %590 }
  0xe1   :  { %v2550_v40 = vpop.f32.mrb[4].mxu0  ;;  %v143_v41 = vpack.c.bf16 %v137_v38, %v136_v37 }
  0xe2   :  { %v131_v42 = vadd.f32 %v2550_v40, %v3079_v26  ;;  %v122_v43 = vpop.f32.mrb[5].mxu0 }
  0xe3   :  { %v123_v44 = vadd.f32 %v3079_v26, %v122_v43  ;;  %v2551_v45 = vpop.f32.mrb[6].mxu0  ;;  %2568 = vmatprep.mubr.bf16.mxu1 %v143_v41 }
  0xe4   :  { %v142_v46 = vmax.f32 %v131_v42, 0.0  ;;  %v125_v47 = vpop.f32.mrb[7].mxu0  ;;  %2569 = vmatmul.mubr.bf16.vlgmr.msra.gmra.mrb[0].mxu1 %v144_v39 }
  0xe5   :  { %v140_v48 = vmax.f32 %v123_v44, 0.0  ;;  %v126_v49 = vadd.f32 %v3079_v26, %v125_v47  ;;  %2601 = vmatpush3.bf16.msra.mxu1 %v2869_v56 }
  0xe6   :  { %v146_v51 = vpack.c.bf16 %v142_v46, %v142_v46  ;;  %2602 = vmatprep.subr.bf16.mxu1 %v2870_v57 }
  0xe7   :  { %v141_v50 = vmax.f32 %v126_v49, 0.0 }
  0xe9   :  { %v145_v52 = vpack.c.bf16 %v141_v50, %v140_v48  ;;  %2603 = vmatpush3.bf16.msra.mxu1 %v2870_v57 }
  0xea   :  { %2604 = vmatprep.subr.bf16.mxu1 %v2871_v30 }
  0xeb   :  { %2572 = vmatprep.mubr.bf16.mxu1 %v145_v52 }
  0xec   :  { %2573 = vmatmul.mubr.bf16.gmra.mrb[4].mxu1 %v146_v51  ;;  %v2874_v51 = vld [vmem:[%s3558_s3 + $0x8] sm:$0xff]  }
  0xed   :  { %2605 = vmatpush3.bf16.msra.mxu1 %v2871_v30 }
  0xee   :  { %2606 = vmatprep.subr.bf16.mxu1 %v2872_v31 }
  0xf1   :  { %2607 = vmatpush3.bf16.msra.mxu1 %v2872_v31  ;;  %v2880_v31 = vld [vmem:[%s3558_s3 + $0x38] sm:$0xff]  }
  0xf2   :  { %2626 = vmatprep.subr.bf16.mxu1 %v2873_v32 }
 0x1b7   :  { %v2570_v59 = vpop.f32.mrb[0].mxu1 }
 0x1b8   :  { %v261_v60 = vadd.f32 %v2570_v59, %v3106_v58  ;;  %v252_v61 = vpop.f32.mrb[1].mxu1  ;;  %v2875_v59 = vld [vmem:[%s3558_s3 + $0x10] sm:$0xff]  }
 0x1b9   :  { %v253_v62 = vadd.f32 %v3106_v58, %v252_v61  ;;  %v2571_v63 = vpop.f32.mrb[2].mxu1 }
 0x1ba   :  { %v264_v0 = vadd.f32 %v2571_v63, %v3106_v58  ;;  %v255_v1 = vpop.f32.mrb[3].mxu1  ;;  %v284_v3 = vmax.f32 %v261_v60, 0.0 }
 0x1bb   :  { %v256_v2 = vadd.f32 %v3106_v58, %v255_v1  ;;  %v282_v6 = vmax.f32 %v253_v62, 0.0 }
 0x1bc   :  { %v285_v5 = vmax.f32 %v264_v0, 0.0  ;;  %v2876_v0 = vld [vmem:[%s3558_s3 + $0x18] sm:$0xff]  }
 0x1bd   :  { %v283_v7 = vmax.f32 %v256_v2, 0.0 }
 0x1be   :  { %v290_v10 = vpack.c.bf16 %v285_v5, %v284_v3 }
 0x1bf   :  { %v289_v11 = vpack.c.bf16 %v283_v7, %v282_v6  ;;  %v2574_v12 = vpop.f32.mrb[4].mxu1 }
 0x1c0   :  { %v277_v13 = vadd.f32 %v2574_v12, %v3106_v58  ;;  %v268_v15 = vpop.f32.mrb[5].mxu1 }
 0x1c1   :  { %v269_v16 = vadd.f32 %v3106_v58, %v268_v15  ;;  %v2575_v17 = vpop.f32.mrb[6].mxu1  ;;  %2592 = vmatprep.mubr.bf16.mxu0 %v289_v11 }
 0x1c2   :  { %v288_v18 = vmax.f32 %v277_v13, 0.0  ;;  %v271_v19 = vpop.f32.mrb[7].mxu1  ;;  %2593 = vmatmul.mubr.bf16.vlgmr.msra.gmra.mrb[8].mxu0 %v290_v10  ;;  %v2877_v13 = vld [vmem:[%s3558_s3 + $0x20] sm:$0xff]  }
 0x1c3   :  { %v286_v20 = vmax.f32 %v269_v16, 0.0  ;;  %v272_v21 = vadd.f32 %v3106_v58, %v271_v19  ;;  %2617 = vmatpush3.bf16.msra.mxu0 %v2868_v55 }
 0x1c4   :  { %v292_v23 = vpack.c.bf16 %v288_v18, %v288_v18 }
 0x1c5   :  { %v287_v22 = vmax.f32 %v272_v21, 0.0 }
 0x1c7   :  { %v291_v24 = vpack.c.bf16 %v287_v22, %v286_v20  ;;  %v2878_v20 = vld [vmem:[%s3558_s3 + $0x28] sm:$0xff]  }
 0x1c9   :  { %2596 = vmatprep.mubr.bf16.mxu0 %v291_v24 }
 0x1ca   :  { %2597 = vmatmul.mubr.bf16.gmra.mrb[12].mxu0 %v292_v23 }
 0x1cb   :  { %2618 = vmatprep.mubr.msk.bf16.mxu0 %vm59_vm0, %v585_v25 }
 0x1d2   :  { %2619 = vmatmul.mubr.msk.bf16.vlgmr.msra.gmra.mrb[16].mxu0 %vm59_vm0, %v587_v27 }
 0x1d3   :  { %2622 = vmatprep.mubr.msk.bf16.mxu0 %vm59_vm0, %v589_v28  ;;  %v2879_v28 = vld [vmem:[%s3558_s3 + $0x30] sm:$0xff]  }
 0x1da   :  { %2623 = vmatmul.mubr.msk.bf16.gmra.mrb[20].mxu0 %vm59_vm0, %v591_v29 }
 0x295   :  { %v2594_v34 = vpop.f32.mrb[8].mxu0 }
 0x296   :  { %v407_v35 = vadd.f32 %v2594_v34, %v3139_v33  ;;  %v398_v36 = vpop.f32.mrb[9].mxu0 }
 0x297   :  { %v399_v37 = vadd.f32 %v3139_v33, %v398_v36  ;;  %v2595_v38 = vpop.f32.mrb[10].mxu0  ;;  %v2881_v36 = vld [vmem:[%s3559_s5] sm:$0xff]  }
 0x298   :  { %v410_v39 = vadd.f32 %v2595_v38, %v3139_v33  ;;  %v401_v40 = vpop.f32.mrb[11].mxu0  ;;  %v430_v42 = vmax.f32 %v407_v35, 0.0  ;;  %2650 = vmatprep.subr.bf16.mxu0 %v2881_v36  ;;  %v2883_v38 = vld [vmem:[%s3559_s5 + $0x10] sm:$0xff]  }
 0x299   :  { %v402_v41 = vadd.f32 %v3139_v33, %v401_v40  ;;  %v428_v44 = vmax.f32 %v399_v37, 0.0  ;;  %2651 = vmatpush3.bf16.msra.mxu0 %v2881_v36  ;;  %v2882_v37 = vld [vmem:[%s3559_s5 + $0x8] sm:$0xff]   ;;  %v2885_v40 = vld [vmem:[%s3559_s5 + $0x20] sm:$0xff]  }
 0x29a   :  { %v431_v43 = vmax.f32 %v410_v39, 0.0  ;;  %2652 = vmatprep.subr.bf16.mxu0 %v2882_v37  ;;  %v2884_v39 = vld [vmem:[%s3559_s5 + $0x18] sm:$0xff]  }
 0x29b   :  { %v429_v45 = vmax.f32 %v402_v41, 0.0  ;;  %v2886_v41 = vld [vmem:[%s3559_s5 + $0x28] sm:$0xff]  }
 0x29c   :  { %v436_v46 = vpack.c.bf16 %v431_v43, %v430_v42  ;;  %v2887_v42 = vld [vmem:[%s3559_s5 + $0x30] sm:$0xff]   ;;  %v2888_v43 = vld [vmem:[%s3559_s5 + $0x38] sm:$0xff]  }
 0x29d   :  { %v435_v47 = vpack.c.bf16 %v429_v45, %v428_v44  ;;  %v2598_v48 = vpop.f32.mrb[12].mxu0  ;;  %2653 = vmatpush3.bf16.msra.mxu0 %v2882_v37  ;;  %v3207_v44 = vld [vmem:[%s3556_s1] sm:$0xff]  }
 0x29e   :  { %v423_v49 = vadd.f32 %v2598_v48, %v3139_v33  ;;  %v414_v50 = vpop.f32.mrb[13].mxu0  ;;  %2654 = vmatprep.subr.bf16.mxu0 %v2883_v38  ;;  %v2890_v45 = vld [vmem:[%s3561_s7] sm:$0xff]  }
 0x29f   :  { %v415_v52 = vadd.f32 %v3139_v33, %v414_v50  ;;  %v2599_v53 = vpop.f32.mrb[14].mxu0  ;;  %2608 = vmatprep.mubr.msk.bf16.mxu1 %vm478_vm1, %v435_v47  ;;  %v3219_v47 = vld [vmem:[%s3564_s8] ss:$0 sm:$0xff] }
 0x2a0   :  { %v434_v54 = vmax.f32 %v423_v49, 0.0  ;;  %v417_v55 = vpop.f32.mrb[15].mxu0  ;;  %2609 = vmatmul.mubr.msk.bf16.vlgmr.msra.gmra.mrb[8].mxu1 %vm478_vm1, %v436_v46  ;;  %v2891_v46 = vld [vmem:[%s3561_s7 + $0x8] sm:$0xff]  }
 0x2a1   :  { %v432_v56 = vmax.f32 %v415_v52, 0.0  ;;  %v418_v57 = vadd.f32 %v3139_v33, %v417_v55  ;;  %2627 = vmatpush3.bf16.msra.mxu1 %v2873_v32  ;;  %2655 = vmatpush3.bf16.msra.mxu0 %v2883_v38 }
 0x2a2   :  { %2628 = vmatprep.subr.bf16.mxu1 %v2874_v51  ;;  %v438_v61 = vpack.c.bf16 %v434_v54, %v434_v54  ;;  %2656 = vmatprep.subr.bf16.mxu0 %v2884_v39 }
 0x2a3   :  { %v433_v60 = vmax.f32 %v418_v57, 0.0 }
 0x2a5   :  { %v437_v62 = vpack.c.bf16 %v433_v60, %v432_v56  ;;  %2629 = vmatpush3.bf16.msra.mxu1 %v2874_v51  ;;  %v2620_v63 = vpop.f32.mrb[16].mxu0  ;;  %2657 = vmatpush3.bf16.msra.mxu0 %v2884_v39  ;;  %v1146_v39 = vpop.permute.xlu0 %1145 }
 0x2a6   :  { %2630 = vmatprep.subr.bf16.mxu1 %v2875_v59  ;;  %v653_v1 = vadd.f32 %v2620_v63, %v3079_v26  ;;  %v644_v2 = vpop.f32.mrb[17].mxu0  ;;  %2658 = vmatprep.subr.bf16.mxu0 %v2885_v40 }
 0x2a7   :  { %2612 = vmatprep.mubr.msk.bf16.mxu1 %vm478_vm1, %v437_v62  ;;  %v645_v3 = vadd.f32 %v3079_v26, %v644_v2  ;;  %v2621_v5 = vpop.f32.mrb[18].mxu0 }
 0x2a8   :  { %2613 = vmatmul.mubr.msk.bf16.gmra.mrb[12].mxu1 %vm478_vm1, %v438_v61  ;;  %v676_v6 = vmax.f32 %v653_v1, 0.0  ;;  %v656_v7 = vadd.f32 %v2621_v5, %v3079_v26  ;;  %v647_v10 = vpop.f32.mrb[19].mxu0 }
 0x2a9   :  { %2631 = vmatpush3.bf16.msra.mxu1 %v2875_v59  ;;  %v674_v11 = vmax.f32 %v645_v3, 0.0  ;;  %v648_v12 = vadd.f32 %v3079_v26, %v647_v10  ;;  %2659 = vmatpush3.bf16.msra.mxu0 %v2885_v40  ;;  %v1148_v40 = vpop.permute.xlu1 %1147 }
 0x2aa   :  { %2632 = vmatprep.subr.bf16.mxu1 %v2876_v0  ;;  %v677_v15 = vmax.f32 %v656_v7, 0.0  ;;  %2660 = vmatprep.subr.bf16.mxu0 %v2886_v41 }
 0x2ab   :  { %v675_v16 = vmax.f32 %v648_v12, 0.0 }
 0x2ac   :  { %v682_v17 = vpack.c.bf16 %v677_v15, %v676_v6 }
 0x2ad   :  { %2633 = vmatpush3.bf16.msra.mxu1 %v2876_v0  ;;  %v681_v18 = vpack.c.bf16 %v675_v16, %v674_v11  ;;  %v2624_v19 = vpop.f32.mrb[20].mxu0  ;;  %2661 = vmatpush3.bf16.msra.mxu0 %v2886_v41  ;;  %v1150_v41 = vpop.permute.xlu0 %1149 }
 0x2ae   :  { %2634 = vmatprep.subr.bf16.mxu1 %v2877_v13  ;;  %v660_v21 = vpop.f32.mrb[21].mxu0  ;;  %v669_v32 = vadd.f32 %v2624_v19, %v3079_v26  ;;  %2662 = vmatprep.subr.bf16.mxu0 %v2887_v42 }
 0x2af   :  { %2642 = vmatprep.mubr.bf16.mxu1 %v681_v18  ;;  %v661_v22 = vadd.f32 %v3079_v26, %v660_v21  ;;  %v2625_v23 = vpop.f32.mrb[22].mxu0 }
 0x2b0   :  { %v663_v24 = vpop.f32.mrb[23].mxu0  ;;  %v680_v34 = vmax.f32 %v669_v32, 0.0 }
 0x2b1   :  { %2635 = vmatpush3.bf16.msra.mxu1 %v2877_v13  ;;  %v678_v25 = vmax.f32 %v661_v22, 0.0  ;;  %v664_v27 = vadd.f32 %v3079_v26, %v663_v24  ;;  %2663 = vmatpush3.bf16.msra.mxu0 %v2887_v42  ;;  %v1152_v42 = vpop.permute.xlu1 %1151 }
 0x2b2   :  { %2636 = vmatprep.subr.bf16.mxu1 %v2878_v20  ;;  %v684_v35 = vpack.c.bf16 %v680_v34, %v680_v34  ;;  %2664 = vmatprep.subr.bf16.mxu0 %v2888_v43 }
 0x2b3   :  { %v679_v29 = vmax.f32 %v664_v27, 0.0 }
 0x2b5   :  { %2637 = vmatpush3.bf16.msra.mxu1 %v2878_v20  ;;  %v683_v30 = vpack.c.bf16 %v679_v29, %v678_v25  ;;  %2665 = vmatpush3.bf16.msra.mxu0 %v2888_v43  ;;  %v2892_v43 = vld [vmem:[%s3561_s7 + $0x10] sm:$0xff]  }
 0x2b6   :  { %2638 = vmatprep.subr.bf16.mxu1 %v2879_v28  ;;  %2690 = vmatprep.subr.bf16.mxu0 %v3207_v44 }
 0x2b9   :  { %2639 = vmatpush3.bf16.msra.mxu1 %v2879_v28 }
 0x2ba   :  { %2640 = vmatprep.subr.bf16.mxu1 %v2880_v31 }
 0x2bd   :  { %2641 = vmatpush3.bf16.msra.mxu1 %v2880_v31 }
 0x2be   :  { %2674 = vmatprep.subr.bf16.mxu1 %v2890_v45 }
 0x2c0   :  { %2643 = vmatmul.mubr.bf16.vlgmr.msra.gmra.mrb[16].mxu1 %v682_v17 }
 0x2c1   :  { %2646 = vmatprep.mubr.bf16.mxu1 %v683_v30  ;;  %2675 = vmatpush3.bf16.msra.mxu1 %v2890_v45  ;;  %v2894_v45 = vld [vmem:[%s3558_s3] sm:$0xff]  }
 0x2c2   :  { %2676 = vmatprep.subr.bf16.mxu1 %v2891_v46 }
 0x2c5   :  { %2677 = vmatpush3.bf16.msra.mxu1 %v2891_v46 }
 0x2c6   :  { %2678 = vmatprep.subr.bf16.mxu1 %v2892_v43 }
 0x2c8   :  { %2647 = vmatmul.mubr.bf16.gmra.mrb[20].mxu1 %v684_v35 }
 0x2c9   :  { %2679 = vmatpush3.bf16.msra.mxu1 %v2892_v43 }
 0x373   :  { %v2610_v48 = vpop.f32.mrb[8].mxu1 }
 0x374   :  { %v534_v49 = vadd.f32 %v2610_v48, %v3219_v47  ;;  %v525_v50 = vpop.f32.mrb[9].mxu1 }
 0x375   :  { %v526_v51 = vadd.f32 %v3219_v47, %v525_v50  ;;  %v2611_v52 = vpop.f32.mrb[10].mxu1 }
 0x376   :  { %v557_v53 = vmax.f32 %v534_v49, 0.0  ;;  %v537_v54 = vadd.f32 %v2611_v52, %v3219_v47  ;;  %v528_v55 = vpop.f32.mrb[11].mxu1 }
 0x377   :  { %v555_v56 = vmax.f32 %v526_v51, 0.0  ;;  %v529_v57 = vadd.f32 %v3219_v47, %v528_v55 }
 0x378   :  { %565 = vst.msk [vmem:[%s3565_s9 + $0x10] sm:$0xff] %vm562_vm2, %v557_v53  ;;  %v558_v59 = vmax.f32 %v537_v54, 0.0 }
 0x379   :  { %563 = vst.msk [vmem:[%s3565_s9] sm:$0xff] %vm562_vm2, %v555_v56  ;;  %v556_v60 = vmax.f32 %v529_v57, 0.0 }
 0x37a   :  { %566 = vst.msk [vmem:[%s3565_s9 + $0x18] sm:$0xff] %vm562_vm2, %v558_v59 }
 0x37b   :  { %564 = vst.msk [vmem:[%s3565_s9 + $0x8] sm:$0xff] %vm562_vm2, %v556_v60  ;;  %v2614_v61 = vpop.f32.mrb[12].mxu1 }
 0x37c   :  { %v550_v62 = vadd.f32 %v2614_v61, %v3219_v47  ;;  %v541_v63 = vpop.f32.mrb[13].mxu1  ;;  %v2895_v61 = vld [vmem:[%s3558_s3 + $0x8] sm:$0xff]  }
 0x37d   :  { %v542_v0 = vadd.f32 %v3219_v47, %v541_v63  ;;  %v2615_v1 = vpop.f32.mrb[14].mxu1 }
 0x37e   :  { %v561_v2 = vmax.f32 %v550_v62, 0.0  ;;  %v544_v3 = vpop.f32.mrb[15].mxu1 }
 0x37f   :  { %v559_v5 = vmax.f32 %v542_v0, 0.0  ;;  %v545_v6 = vadd.f32 %v3219_v47, %v544_v3 }
 0x380   :  { %570 = vst.msk [vmem:[%s3565_s9 + $0x30] sm:$0x3] %vm569_vm3, %v561_v2 }
 0x381   :  { %567 = vst.msk [vmem:[%s3565_s9 + $0x20] sm:$0xff] %vm562_vm2, %v559_v5  ;;  %v560_v7 = vmax.f32 %v545_v6, 0.0  ;;  %v2896_v5 = vld [vmem:[%s3558_s3 + $0x10] sm:$0xff]  }
 0x383   :  { %568 = vst.msk [vmem:[%s3565_s9 + $0x28] sm:$0xff] %vm562_vm2, %v560_v7 }
 0x393   :  { %v2644_v10 = vpop.f32.mrb[16].mxu1 }
 0x394   :  { %v799_v11 = vadd.f32 %v2644_v10, %v3106_v58  ;;  %v790_v12 = vpop.f32.mrb[17].mxu1 }
 0x395   :  { %v791_v13 = vadd.f32 %v3106_v58, %v790_v12  ;;  %v2645_v15 = vpop.f32.mrb[18].mxu1  ;;  %v2897_v12 = vld [vmem:[%s3558_s3 + $0x18] sm:$0xff]  }
 0x396   :  { %v802_v16 = vadd.f32 %v2645_v15, %v3106_v58  ;;  %v793_v17 = vpop.f32.mrb[19].mxu1  ;;  %v822_v19 = vmax.f32 %v799_v11, 0.0 }
 0x397   :  { %v794_v18 = vadd.f32 %v3106_v58, %v793_v17  ;;  %v820_v21 = vmax.f32 %v791_v13, 0.0 }
 0x398   :  { %v823_v20 = vmax.f32 %v802_v16, 0.0 }
 0x399   :  { %v821_v22 = vmax.f32 %v794_v18, 0.0 }
 0x39a   :  { %v828_v23 = vpack.c.bf16 %v823_v20, %v822_v19 }
 0x39b   :  { %v827_v24 = vpack.c.bf16 %v821_v22, %v820_v21  ;;  %v2648_v25 = vpop.f32.mrb[20].mxu1 }
 0x39c   :  { %v815_v27 = vadd.f32 %v2648_v25, %v3106_v58  ;;  %v806_v28 = vpop.f32.mrb[21].mxu1 }
 0x39d   :  { %v807_v29 = vadd.f32 %v3106_v58, %v806_v28  ;;  %v2649_v30 = vpop.f32.mrb[22].mxu1  ;;  %2666 = vmatprep.mubr.bf16.mxu0 %v827_v24 }
 0x39e   :  { %v826_v31 = vmax.f32 %v815_v27, 0.0  ;;  %v809_v32 = vpop.f32.mrb[23].mxu1  ;;  %2667 = vmatmul.mubr.bf16.vlgmr.msra.gmra.mrb[24].mxu0 %v828_v23  ;;  %v2898_v23 = vld [vmem:[%s3558_s3 + $0x20] sm:$0xff]   ;;  %v2899_v30 = vld [vmem:[%s3558_s3 + $0x28] sm:$0xff]  }
 0x39f   :  { %v824_v34 = vmax.f32 %v807_v29, 0.0  ;;  %v810_v35 = vadd.f32 %v3106_v58, %v809_v32  ;;  %2691 = vmatpush3.bf16.msra.mxu0 %v3207_v44  ;;  %v2893_v44 = vld [vmem:[%s3561_s7 + $0x18] sm:$0xff]  }
 0x3a0   :  { %v830_v37 = vpack.c.bf16 %v826_v31, %v826_v31  ;;  %2680 = vmatprep.subr.bf16.mxu1 %v2893_v44 }
 0x3a1   :  { %v825_v36 = vmax.f32 %v810_v35, 0.0  ;;  %2681 = vmatpush3.bf16.msra.mxu1 %v2893_v44 }
 0x3a2   :  { %2700 = vmatprep.subr.bf16.mxu1 %v2894_v45 }
 0x3a3   :  { %v829_v38 = vpack.c.bf16 %v825_v36, %v824_v34 }
 0x3a5   :  { %2670 = vmatprep.mubr.bf16.mxu0 %v829_v38  ;;  %v2900_v38 = vld [vmem:[%s3558_s3 + $0x30] sm:$0xff]  }
 0x3a6   :  { %2671 = vmatmul.mubr.bf16.gmra.mrb[28].mxu0 %v830_v37 }
 0x3a7   :  { %2692 = vmatprep.mubr.msk.bf16.mxu0 %vm59_vm0, %v1146_v39 }
 0x3ae   :  { %2693 = vmatmul.mubr.msk.bf16.vlgmr.msra.gmra.mrb[32].mxu0 %vm59_vm0, %v1148_v40 }
 0x3af   :  { %2696 = vmatprep.mubr.msk.bf16.mxu0 %vm59_vm0, %v1150_v41  ;;  %v2901_v41 = vld [vmem:[%s3558_s3 + $0x38] sm:$0xff]  }
 0x3b6   :  { %2697 = vmatmul.mubr.msk.bf16.gmra.mrb[36].mxu0 %vm59_vm0, %v1152_v42 }
 0x471   :  { %v2668_v46 = vpop.f32.mrb[24].mxu0 }
 0x472   :  { %v945_v48 = vadd.f32 %v2668_v46, %v3139_v33  ;;  %v936_v49 = vpop.f32.mrb[25].mxu0  ;;  %v2903_v46 = vld [vmem:[%s3559_s5 + $0x8] sm:$0xff]  }
 0x473   :  { %v937_v50 = vadd.f32 %v3139_v33, %v936_v49  ;;  %v2669_v51 = vpop.f32.mrb[26].mxu0  ;;  %v2906_v49 = vld [vmem:[%s3559_s5 + $0x20] sm:$0xff]  }
 0x474   :  { %v948_v52 = vadd.f32 %v2669_v51, %v3139_v33  ;;  %v939_v53 = vpop.f32.mrb[27].mxu0  ;;  %v968_v55 = vmax.f32 %v945_v48, 0.0  ;;  %v2905_v48 = vld [vmem:[%s3559_s5 + $0x18] sm:$0xff]   ;;  %v2908_v51 = vld [vmem:[%s3559_s5 + $0x30] sm:$0xff]  }
 0x475   :  { %v940_v54 = vadd.f32 %v3139_v33, %v939_v53  ;;  %v966_v56 = vmax.f32 %v937_v50, 0.0  ;;  %v2907_v50 = vld [vmem:[%s3559_s5 + $0x28] sm:$0xff]   ;;  %v3346_v53 = vld [vmem:[%s3556_s1] sm:$0xff]  }
 0x476   :  { %v969_v4 = vmax.f32 %v948_v52, 0.0  ;;  %v2909_v52 = vld [vmem:[%s3559_s5 + $0x38] sm:$0xff]  }
 0x477   :  { %v967_v8 = vmax.f32 %v940_v54, 0.0 }
 0x478   :  { %v974_v57 = vpack.c.bf16 %v969_v4, %v968_v55 }
 0x479   :  { %v973_v9 = vpack.c.bf16 %v967_v8, %v966_v56  ;;  %v2672_v59 = vpop.f32.mrb[28].mxu0 }
 0x47a   :  { %v961_v14 = vadd.f32 %v2672_v59, %v3139_v33  ;;  %v952_v60 = vpop.f32.mrb[29].mxu0 }
 0x47b   :  { %v953_v62 = vadd.f32 %v3139_v33, %v952_v60  ;;  %v2673_v63 = vpop.f32.mrb[30].mxu0  ;;  %2682 = vmatprep.mubr.msk.bf16.mxu1 %vm478_vm1, %v973_v9  ;;  %v2912_v60 = vld [vmem:[%s3561_s7 + $0x8] sm:$0xff]  }
 0x47c   :  { %v972_v0 = vmax.f32 %v961_v14, 0.0  ;;  %v955_v1 = vpop.f32.mrb[31].mxu0  ;;  %2683 = vmatmul.mubr.msk.bf16.vlgmr.msra.gmra.mrb[24].mxu1 %vm478_vm1, %v974_v57  ;;  %v2911_v14 = vld [vmem:[%s3561_s7] sm:$0xff]  }
 0x47d   :  { %v970_v2 = vmax.f32 %v953_v62, 0.0  ;;  %v956_v3 = vadd.f32 %v3139_v33, %v955_v1  ;;  %2701 = vmatpush3.bf16.msra.mxu1 %v2894_v45  ;;  %v2902_v45 = vld [vmem:[%s3559_s5] sm:$0xff]  }
 0x47e   :  { %2702 = vmatprep.subr.bf16.mxu1 %v2895_v61  ;;  %v976_v7 = vpack.c.bf16 %v972_v0, %v972_v0  ;;  %2724 = vmatprep.subr.bf16.mxu0 %v2902_v45 }
 0x47f   :  { %v971_v6 = vmax.f32 %v956_v3, 0.0  ;;  %2725 = vmatpush3.bf16.msra.mxu0 %v2902_v45 }
 0x480   :  { %2726 = vmatprep.subr.bf16.mxu0 %v2903_v46 }
 0x481   :  { %v975_v10 = vpack.c.bf16 %v971_v6, %v970_v2  ;;  %2703 = vmatpush3.bf16.msra.mxu1 %v2895_v61  ;;  %v2694_v11 = vpop.f32.mrb[32].mxu0 }
 0x482   :  { %2704 = vmatprep.subr.bf16.mxu1 %v2896_v5  ;;  %v1214_v13 = vadd.f32 %v2694_v11, %v3079_v26  ;;  %v1205_v15 = vpop.f32.mrb[33].mxu0 }
 0x483   :  { %2686 = vmatprep.mubr.msk.bf16.mxu1 %vm478_vm1, %v975_v10  ;;  %v1206_v16 = vadd.f32 %v3079_v26, %v1205_v15  ;;  %v2695_v17 = vpop.f32.mrb[34].mxu0  ;;  %2727 = vmatpush3.bf16.msra.mxu0 %v2903_v46 }
 0x484   :  { %2687 = vmatmul.mubr.msk.bf16.gmra.mrb[28].mxu1 %vm478_vm1, %v976_v7  ;;  %v1237_v18 = vmax.f32 %v1214_v13, 0.0  ;;  %v1217_v19 = vadd.f32 %v2695_v17, %v3079_v26  ;;  %v1208_v20 = vpop.f32.mrb[35].mxu0 }
 0x485   :  { %2705 = vmatpush3.bf16.msra.mxu1 %v2896_v5  ;;  %v1235_v21 = vmax.f32 %v1206_v16, 0.0  ;;  %v1209_v22 = vadd.f32 %v3079_v26, %v1208_v20 }
 0x486   :  { %2706 = vmatprep.subr.bf16.mxu1 %v2897_v12  ;;  %v1238_v24 = vmax.f32 %v1217_v19, 0.0 }
 0x487   :  { %v1236_v25 = vmax.f32 %v1209_v22, 0.0 }
 0x488   :  { %v1243_v27 = vpack.c.bf16 %v1238_v24, %v1237_v18 }
 0x489   :  { %2707 = vmatpush3.bf16.msra.mxu1 %v2897_v12  ;;  %v1242_v28 = vpack.c.bf16 %v1236_v25, %v1235_v21  ;;  %v2698_v29 = vpop.f32.mrb[36].mxu0 }
 0x48a   :  { %2708 = vmatprep.subr.bf16.mxu1 %v2898_v23  ;;  %v1221_v31 = vpop.f32.mrb[37].mxu0  ;;  %v1230_v42 = vadd.f32 %v2698_v29, %v3079_v26 }
 0x48b   :  { %2716 = vmatprep.mubr.bf16.mxu1 %v1242_v28  ;;  %v1222_v32 = vadd.f32 %v3079_v26, %v1221_v31  ;;  %v2699_v34 = vpop.f32.mrb[38].mxu0 }
 0x48c   :  { %v1224_v35 = vpop.f32.mrb[39].mxu0  ;;  %v1241_v43 = vmax.f32 %v1230_v42, 0.0 }
 0x48d   :  { %2709 = vmatpush3.bf16.msra.mxu1 %v2898_v23  ;;  %v1239_v36 = vmax.f32 %v1222_v32, 0.0  ;;  %v1225_v37 = vadd.f32 %v3079_v26, %v1224_v35  ;;  %v2904_v26 = vld [vmem:[%s3559_s5 + $0x10] sm:$0xff]  }
 0x48e   :  { %2710 = vmatprep.subr.bf16.mxu1 %v2899_v30  ;;  %v1245_v44 = vpack.c.bf16 %v1241_v43, %v1241_v43  ;;  %2728 = vmatprep.subr.bf16.mxu0 %v2904_v26  ;;  %v1707_v43 = vpop.permute.xlu0 %1706 }
 0x48f   :  { %v1240_v39 = vmax.f32 %v1225_v37, 0.0  ;;  %2729 = vmatpush3.bf16.msra.mxu0 %v2904_v26 }
 0x490   :  { %2730 = vmatprep.subr.bf16.mxu0 %v2905_v48 }
 0x491   :  { %2711 = vmatpush3.bf16.msra.mxu1 %v2899_v30  ;;  %v1244_v40 = vpack.c.bf16 %v1240_v39, %v1239_v36 }
 0x492   :  { %2712 = vmatprep.subr.bf16.mxu1 %v2900_v38  ;;  %v1711_v45 = vpop.permute.xlu0 %1710 }
 0x493   :  { %2731 = vmatpush3.bf16.msra.mxu0 %v2905_v48 }
 0x494   :  { %2732 = vmatprep.subr.bf16.mxu0 %v2906_v49 }
 0x495   :  { %2713 = vmatpush3.bf16.msra.mxu1 %v2900_v38 }
 0x496   :  { %2714 = vmatprep.subr.bf16.mxu1 %v2901_v41 }
 0x497   :  { %2733 = vmatpush3.bf16.msra.mxu0 %v2906_v49 }
 0x498   :  { %2734 = vmatprep.subr.bf16.mxu0 %v2907_v50 }
 0x499   :  { %2715 = vmatpush3.bf16.msra.mxu1 %v2901_v41 }
 0x49a   :  { %2748 = vmatprep.subr.bf16.mxu1 %v2911_v14 }
 0x49b   :  { %2735 = vmatpush3.bf16.msra.mxu0 %v2907_v50  ;;  %v2913_v50 = vld [vmem:[%s3561_s7 + $0x10] sm:$0xff]  }
 0x49c   :  { %2717 = vmatmul.mubr.bf16.vlgmr.msra.gmra.mrb[32].mxu1 %v1243_v27  ;;  %2736 = vmatprep.subr.bf16.mxu0 %v2908_v51 }
 0x49d   :  { %2720 = vmatprep.mubr.bf16.mxu1 %v1244_v40  ;;  %2749 = vmatpush3.bf16.msra.mxu1 %v2911_v14 }
 0x49e   :  { %2750 = vmatprep.subr.bf16.mxu1 %v2912_v60 }
 0x49f   :  { %2737 = vmatpush3.bf16.msra.mxu0 %v2908_v51 }
 0x4a0   :  { %2738 = vmatprep.subr.bf16.mxu0 %v2909_v52 }
 0x4a1   :  { %2751 = vmatpush3.bf16.msra.mxu1 %v2912_v60 }
 0x4a2   :  { %2752 = vmatprep.subr.bf16.mxu1 %v2913_v50 }
 0x4a3   :  { %2739 = vmatpush3.bf16.msra.mxu0 %v2909_v52 }
 0x4a4   :  { %2721 = vmatmul.mubr.bf16.gmra.mrb[36].mxu1 %v1245_v44  ;;  %2764 = vmatprep.subr.bf16.mxu0 %v3346_v53  ;;  %v1709_v44 = vpop.permute.xlu1 %1708 }
 0x4a5   :  { %2753 = vmatpush3.bf16.msra.mxu1 %v2913_v50 }
 0x4a8   :  { %v1713_v46 = vpop.permute.xlu1 %1712 }
 0x54f   :  { %v2684_v54 = vpop.f32.mrb[24].mxu1 }
 0x550   :  { %v1071_v55 = vadd.f32 %v2684_v54, %v3219_v47  ;;  %v1062_v4 = vpop.f32.mrb[25].mxu1 }
 0x551   :  { %v2685_v56 = vpop.f32.mrb[26].mxu1  ;;  %v1063_v57 = vadd.f32 %v3219_v47, %v1062_v4 }
 0x552   :  { %v1094_v8 = vmax.f32 %v1071_v55, 0.0  ;;  %v1074_v9 = vadd.f32 %v2685_v56, %v3219_v47  ;;  %v1065_v59 = vpop.f32.mrb[27].mxu1  ;;  %v2915_v55 = vld [vmem:[%s3558_s3] sm:$0xff]  }
 0x553   :  { %v1066_v62 = vadd.f32 %v3219_v47, %v1065_v59  ;;  %v1092_v63 = vmax.f32 %v1063_v57, 0.0 }
 0x554   :  { %v1095_v61 = vmax.f32 %v1074_v9, 0.0  ;;  %1110 = vrot.lane.b32.xlu0 %v1094_v8, %s2938_s21 }
 0x555   :  { %v1093_v1 = vmax.f32 %v1066_v62, 0.0 }
 0x556   :  { %1112 = vrot.lane.b32.xlu1 %v1095_v61, %s2938_s21 }
 0x557   :  { %v2688_v0 = vpop.f32.mrb[28].mxu1 }
 0x558   :  { %v1087_v2 = vadd.f32 %v2688_v0, %v3219_v47  ;;  %v1078_v3 = vpop.f32.mrb[29].mxu1  ;;  %1106 = vrot.lane.b32.xlu0 %v1092_v63, %s2938_s21 }
 0x559   :  { %v1079_v5 = vadd.f32 %v3219_v47, %v1078_v3  ;;  %v2689_v6 = vpop.f32.mrb[30].mxu1 }
 0x55a   :  { %v1098_v7 = vmax.f32 %v1087_v2, 0.0  ;;  %v1081_v10 = vpop.f32.mrb[31].mxu1  ;;  %1108 = vrot.lane.b32.xlu1 %v1093_v1, %s2938_s21 }
 0x55b   :  { %v1082_v11 = vadd.f32 %v3219_v47, %v1081_v10  ;;  %v1096_v12 = vmax.f32 %v1079_v5, 0.0 }
 0x55c   :  { %1118 = vrot.lane.b32.xlu0 %v1098_v7, %s2938_s21  ;;  %v2916_v7 = vld [vmem:[%s3558_s3 + $0x8] sm:$0xff]  }
 0x55d   :  { %v1097_v13 = vmax.f32 %v1082_v11, 0.0 }
 0x55f   :  { %1116 = vrot.lane.b32.xlu1 %v1097_v13, %s2938_s21 }
 0x560   :  { %1114 = vrot.lane.b32.xlu0 %v1096_v12, %s2938_s21 }
 0x56f   :  { %v2718_v15 = vpop.f32.mrb[32].mxu1 }
 0x570   :  { %v1360_v16 = vadd.f32 %v2718_v15, %v3106_v58  ;;  %v1351_v17 = vpop.f32.mrb[33].mxu1 }
 0x571   :  { %v1352_v18 = vadd.f32 %v3106_v58, %v1351_v17  ;;  %v2719_v19 = vpop.f32.mrb[34].mxu1  ;;  %v2917_v17 = vld [vmem:[%s3558_s3 + $0x10] sm:$0xff]  }
 0x572   :  { %v1363_v20 = vadd.f32 %v2719_v19, %v3106_v58  ;;  %v1354_v21 = vpop.f32.mrb[35].mxu1  ;;  %v1383_v23 = vmax.f32 %v1360_v16, 0.0  ;;  %v2361_v19 = vld [vmem:[%s3560_s2] ss:$0 sm:$0xff] }
 0x573   :  { %v1355_v22 = vadd.f32 %v3106_v58, %v1354_v21  ;;  %v1381_v25 = vmax.f32 %v1352_v18, 0.0 }
 0x574   :  { %v1384_v24 = vmax.f32 %v1363_v20, 0.0 }
 0x575   :  { %v1382_v27 = vmax.f32 %v1355_v22, 0.0 }
 0x576   :  { %v1389_v28 = vpack.c.bf16 %v1384_v24, %v1383_v23 }
 0x577   :  { %v1388_v29 = vpack.c.bf16 %v1382_v27, %v1381_v25  ;;  %v2722_v30 = vpop.f32.mrb[36].mxu1 }
 0x578   :  { %v1376_v31 = vadd.f32 %v2722_v30, %v3106_v58  ;;  %v1367_v32 = vpop.f32.mrb[37].mxu1 }
 0x579   :  { %v1368_v34 = vadd.f32 %v3106_v58, %v1367_v32  ;;  %v2723_v35 = vpop.f32.mrb[38].mxu1  ;;  %2740 = vmatprep.mubr.bf16.mxu0 %v1388_v29 }
 0x57a   :  { %v1387_v36 = vmax.f32 %v1376_v31, 0.0  ;;  %v1370_v37 = vpop.f32.mrb[39].mxu1  ;;  %2741 = vmatmul.mubr.bf16.vlgmr.msra.gmra.mrb[40].mxu0 %v1389_v28 }
 0x57b   :  { %v1385_v38 = vmax.f32 %v1368_v34, 0.0  ;;  %v1371_v39 = vadd.f32 %v3106_v58, %v1370_v37  ;;  %2765 = vmatpush3.bf16.msra.mxu0 %v3346_v53  ;;  %v2914_v53 = vld [vmem:[%s3561_s7 + $0x18] sm:$0xff]   ;;  %v2919_v34 = vld [vmem:[%s3558_s3 + $0x20] sm:$0xff]  }
 0x57c   :  { %v1391_v41 = vpack.c.bf16 %v1387_v36, %v1387_v36  ;;  %2754 = vmatprep.subr.bf16.mxu1 %v2914_v53 }
 0x57d   :  { %v1386_v40 = vmax.f32 %v1371_v39, 0.0  ;;  %2755 = vmatpush3.bf16.msra.mxu1 %v2914_v53  ;;  %v2923_v53 = vld [vmem:[%s3559_s5] sm:$0xff]  }
 0x57e   :  { %2774 = vmatprep.subr.bf16.mxu1 %v2915_v55  ;;  %2798 = vmatprep.subr.bf16.mxu0 %v2923_v53 }
 0x57f   :  { %v1390_v42 = vpack.c.bf16 %v1386_v40, %v1385_v38  ;;  %v2920_v40 = vld [vmem:[%s3558_s3 + $0x28] sm:$0xff]  }
 0x581   :  { %2744 = vmatprep.mubr.bf16.mxu0 %v1390_v42 }
 0x582   :  { %2745 = vmatmul.mubr.bf16.gmra.mrb[44].mxu0 %v1391_v41 }
 0x583   :  { %2766 = vmatprep.mubr.msk.bf16.mxu0 %vm59_vm0, %v1707_v43 }
 0x58a   :  { %2767 = vmatmul.mubr.msk.bf16.vlgmr.msra.gmra.mrb[48].mxu0 %vm59_vm0, %v1709_v44 }
 0x58b   :  { %2770 = vmatprep.mubr.msk.bf16.mxu0 %vm59_vm0, %v1711_v45  ;;  %2799 = vmatpush3.bf16.msra.mxu0 %v2923_v53  ;;  %v2933_v53 = vld [vmem:[%s3561_s7 + $0x10] sm:$0xff]  }
 0x592   :  { %2771 = vmatmul.mubr.msk.bf16.gmra.mrb[52].mxu0 %vm59_vm0, %v1713_v46 }
 0x5c6   :  { %v1111_v58 = vpop.permute.xlu0 %1110 }
 0x5c7   :  { %1130 = vst.msk [vmem:[%s3565_s9 + $0x10] sm:$0xff] %vm1127_vm4, %v1111_v58  ;;  %v2921_v58 = vld [vmem:[%s3558_s3 + $0x30] sm:$0xff]  }
 0x5c8   :  { %v1113_v26 = vpop.permute.xlu1 %1112 }
 0x5c9   :  { %1131 = vst.msk [vmem:[%s3565_s9 + $0x18] sm:$0xff] %vm1127_vm4, %v1113_v26 }
 0x5ca   :  { %v1107_v48 = vpop.permute.xlu0 %1106 }
 0x5cb   :  { %1128 = vst.msk [vmem:[%s3565_s9] sm:$0xff] %vm1127_vm4, %v1107_v48 }
 0x5cc   :  { %v1109_v49 = vpop.permute.xlu1 %1108 }
 0x5cd   :  { %1129 = vst.msk [vmem:[%s3565_s9 + $0x8] sm:$0xff] %vm1127_vm4, %v1109_v49  ;;  %v2922_v49 = vld [vmem:[%s3558_s3 + $0x38] sm:$0xff]  }
 0x5ce   :  { %v1119_v51 = vpop.permute.xlu0 %1118 }
 0x5cf   :  { %1135 = vst.msk [vmem:[%s3565_s9 + $0x30] sm:$0x3] %vm1134_vm5, %v1119_v51 }
 0x5d1   :  { %v1117_v52 = vpop.permute.xlu1 %1116 }
 0x5d2   :  { %1133 = vst.msk [vmem:[%s3565_s9 + $0x28] sm:$0xff] %vm1127_vm4, %v1117_v52  ;;  %v1115_v54 = vpop.permute.xlu0 %1114 }
 0x5d3   :  { %1132 = vst.msk [vmem:[%s3565_s9 + $0x20] sm:$0xff] %vm1127_vm4, %v1115_v54  ;;  %v2924_v54 = vld [vmem:[%s3559_s5 + $0x8] sm:$0xff]  }
 0x5d4   :  { %2800 = vmatprep.subr.bf16.mxu0 %v2924_v54 }
 0x5d5   :  { %2801 = vmatpush3.bf16.msra.mxu0 %v2924_v54 }
 0x64d   :  { %v2742_v4 = vpop.f32.mrb[40].mxu0 }
 0x64e   :  { %v1506_v56 = vadd.f32 %v2742_v4, %v3139_v33  ;;  %v1497_v8 = vpop.f32.mrb[41].mxu0  ;;  %v2926_v4 = vld [vmem:[%s3559_s5 + $0x18] sm:$0xff]  }
 0x64f   :  { %v1498_v57 = vadd.f32 %v3139_v33, %v1497_v8  ;;  %v2743_v9 = vpop.f32.mrb[42].mxu0  ;;  %v2928_v8 = vld [vmem:[%s3559_s5 + $0x28] sm:$0xff]  }
 0x650   :  { %v1509_v59 = vadd.f32 %v2743_v9, %v3139_v33  ;;  %v1500_v14 = vpop.f32.mrb[43].mxu0  ;;  %v1529_v61 = vmax.f32 %v1506_v56, 0.0  ;;  %v2927_v56 = vld [vmem:[%s3559_s5 + $0x20] sm:$0xff]   ;;  %v2930_v9 = vld [vmem:[%s3559_s5 + $0x38] sm:$0xff]  }
 0x651   :  { %v1501_v60 = vadd.f32 %v3139_v33, %v1500_v14  ;;  %v1527_v63 = vmax.f32 %v1498_v57, 0.0  ;;  %v2929_v57 = vld [vmem:[%s3559_s5 + $0x30] sm:$0xff]  }
 0x652   :  { %v1530_v62 = vmax.f32 %v1509_v59, 0.0 }
 0x653   :  { %v1528_v0 = vmax.f32 %v1501_v60, 0.0 }
 0x654   :  { %v1535_v1 = vpack.c.bf16 %v1530_v62, %v1529_v61 }
 0x655   :  { %v1534_v2 = vpack.c.bf16 %v1528_v0, %v1527_v63  ;;  %v2746_v3 = vpop.f32.mrb[44].mxu0 }
 0x656   :  { %v1522_v5 = vadd.f32 %v2746_v3, %v3139_v33  ;;  %v1513_v6 = vpop.f32.mrb[45].mxu0 }
 0x657   :  { %v1514_v10 = vadd.f32 %v3139_v33, %v1513_v6  ;;  %v2747_v11 = vpop.f32.mrb[46].mxu0  ;;  %2756 = vmatprep.mubr.msk.bf16.mxu1 %vm478_vm1, %v1534_v2  ;;  %v2931_v2 = vld [vmem:[%s3561_s7] sm:$0xff]   ;;  %v2932_v6 = vld [vmem:[%s3561_s7 + $0x8] sm:$0xff]  }
 0x658   :  { %v1533_v12 = vmax.f32 %v1522_v5, 0.0  ;;  %v1516_v13 = vpop.f32.mrb[47].mxu0  ;;  %2757 = vmatmul.mubr.msk.bf16.vlgmr.msra.gmra.mrb[40].mxu1 %vm478_vm1, %v1535_v1 }
 0x659   :  { %v1531_v15 = vmax.f32 %v1514_v10, 0.0  ;;  %v1517_v16 = vadd.f32 %v3139_v33, %v1516_v13  ;;  %2775 = vmatpush3.bf16.msra.mxu1 %v2915_v55  ;;  %v2918_v33 = vld [vmem:[%s3558_s3 + $0x18] sm:$0xff]   ;;  %v2925_v55 = vld [vmem:[%s3559_s5 + $0x10] sm:$0xff]   ;;  %s2939_s5 = smov 64  }
 0x65a   :  { %2776 = vmatprep.subr.bf16.mxu1 %v2916_v7  ;;  %v1537_v20 = vpack.c.bf16 %v1533_v12, %v1533_v12  ;;  %2802 = vmatprep.subr.bf16.mxu0 %v2925_v55 }
 0x65b   :  { %v1532_v18 = vmax.f32 %v1517_v16, 0.0  ;;  %2803 = vmatpush3.bf16.msra.mxu0 %v2925_v55 }
 0x65c   :  { %2804 = vmatprep.subr.bf16.mxu0 %v2926_v4 }
 0x65d   :  { %v1536_v21 = vpack.c.bf16 %v1532_v18, %v1531_v15  ;;  %2777 = vmatpush3.bf16.msra.mxu1 %v2916_v7  ;;  %v2768_v22 = vpop.f32.mrb[48].mxu0 }
 0x65e   :  { %2778 = vmatprep.subr.bf16.mxu1 %v2917_v17  ;;  %v1775_v23 = vadd.f32 %v2768_v22, %v2361_v19  ;;  %v1766_v24 = vpop.f32.mrb[49].mxu0  ;;  %v2367_v22 = vld [vmem:[%s3562_s4] ss:$0 sm:$0xff] }
 0x65f   :  { %2760 = vmatprep.mubr.msk.bf16.mxu1 %vm478_vm1, %v1536_v21  ;;  %v1767_v25 = vadd.f32 %v2361_v19, %v1766_v24  ;;  %v2769_v27 = vpop.f32.mrb[50].mxu0  ;;  %2805 = vmatpush3.bf16.msra.mxu0 %v2926_v4  ;;  %v2934_v4 = vld [vmem:[%s3561_s7 + $0x18] sm:$0xff]  }
 0x660   :  { %2761 = vmatmul.mubr.msk.bf16.gmra.mrb[44].mxu1 %vm478_vm1, %v1537_v20  ;;  %v1798_v28 = vmax.f32 %v1775_v23, 0.0  ;;  %v1778_v29 = vadd.f32 %v2769_v27, %v2361_v19  ;;  %v1769_v30 = vpop.f32.mrb[51].mxu0  ;;  %2806 = vmatprep.subr.bf16.mxu0 %v2927_v56 }
 0x661   :  { %2779 = vmatpush3.bf16.msra.mxu1 %v2917_v17  ;;  %v1796_v31 = vmax.f32 %v1767_v25, 0.0  ;;  %v1770_v32 = vadd.f32 %v2361_v19, %v1769_v30 }
 0x662   :  { %2780 = vmatprep.subr.bf16.mxu1 %v2918_v33  ;;  %v1799_v35 = vmax.f32 %v1778_v29, 0.0 }
 0x663   :  { %v1797_v36 = vmax.f32 %v1770_v32, 0.0  ;;  %2807 = vmatpush3.bf16.msra.mxu0 %v2927_v56  ;;  %v2376_v56 = vld [vmem:[%s3563_s6] ss:$0 sm:$0xff] }
 0x664   :  { %v1804_v37 = vpack.c.bf16 %v1799_v35, %v1798_v28  ;;  %2808 = vmatprep.subr.bf16.mxu0 %v2928_v8 }
 0x665   :  { %2781 = vmatpush3.bf16.msra.mxu1 %v2918_v33  ;;  %v1803_v38 = vpack.c.bf16 %v1797_v36, %v1796_v31  ;;  %v2772_v39 = vpop.f32.mrb[52].mxu0 }
 0x666   :  { %2782 = vmatprep.subr.bf16.mxu1 %v2919_v34  ;;  %v1782_v41 = vpop.f32.mrb[53].mxu0  ;;  %v1791_v50 = vadd.f32 %v2772_v39, %v2361_v19 }
 0x667   :  { %v1783_v42 = vadd.f32 %v2361_v19, %v1782_v41  ;;  %v2773_v43 = vpop.f32.mrb[54].mxu0  ;;  %2790 = vmatprep.mubr.bf16.mxu1 %v1803_v38  ;;  %2809 = vmatpush3.bf16.msra.mxu0 %v2928_v8 }
 0x668   :  { %v1785_v44 = vpop.f32.mrb[55].mxu0  ;;  %v1802_v51 = vmax.f32 %v1791_v50, 0.0  ;;  %2810 = vmatprep.subr.bf16.mxu0 %v2929_v57 }
 0x669   :  { %2783 = vmatpush3.bf16.msra.mxu1 %v2919_v34  ;;  %v1800_v45 = vmax.f32 %v1783_v42, 0.0  ;;  %v1786_v46 = vadd.f32 %v2361_v19, %v1785_v44 }
 0x66a   :  { %2784 = vmatprep.subr.bf16.mxu1 %v2920_v40  ;;  %v1806_v52 = vpack.c.bf16 %v1802_v51, %v1802_v51 }
 0x66b   :  { %v1801_v26 = vmax.f32 %v1786_v46, 0.0  ;;  %2811 = vmatpush3.bf16.msra.mxu0 %v2929_v57 }
 0x66c   :  { %2812 = vmatprep.subr.bf16.mxu0 %v2930_v9 }
 0x66d   :  { %2785 = vmatpush3.bf16.msra.mxu1 %v2920_v40  ;;  %v1805_v48 = vpack.c.bf16 %v1801_v26, %v1800_v45 }
 0x66e   :  { %2786 = vmatprep.subr.bf16.mxu1 %v2921_v58 }
 0x66f   :  { %2813 = vmatpush3.bf16.msra.mxu0 %v2930_v9 }
 0x670   :  { %2822 = vmatprep.subr.bf16.mxu0 %v2931_v2 }
 0x671   :  { %2787 = vmatpush3.bf16.msra.mxu1 %v2921_v58 }
 0x672   :  { %2788 = vmatprep.subr.bf16.mxu1 %v2922_v49 }
 0x675   :  { %2789 = vmatpush3.bf16.msra.mxu1 %v2922_v49 }
 0x676   :  { %2838 = vmatprep.subr.bf16.mxu1 %v2931_v2 }
 0x678   :  { %2791 = vmatmul.mubr.bf16.vlgmr.msra.gmra.mrb[48].mxu1 %v1804_v37 }
 0x679   :  { %2794 = vmatprep.mubr.bf16.mxu1 %v1805_v48  ;;  %2842 = vmatpush3.bf16.msra.mxu1 %v2931_v2 }
 0x67a   :  { %2839 = vmatprep.subr.bf16.mxu1 %v2932_v6 }
 0x67d   :  { %2843 = vmatpush3.bf16.msra.mxu1 %v2932_v6 }
 0x67e   :  { %2840 = vmatprep.subr.bf16.mxu1 %v2933_v53 }
 0x680   :  { %2795 = vmatmul.mubr.bf16.gmra.mrb[52].mxu1 %v1806_v52 }
 0x681   :  { %2844 = vmatpush3.bf16.msra.mxu1 %v2933_v53 }
 0x682   :  { %2841 = vmatprep.subr.bf16.mxu1 %v2934_v4 }
 0x685   :  { %2845 = vmatpush3.bf16.msra.mxu1 %v2934_v4 }
 0x72b   :  { %v2758_v59 = vpop.f32.mrb[40].mxu1 }
 0x72c   :  { %v1632_v14 = vadd.f32 %v2758_v59, %v3219_v47  ;;  %v1623_v60 = vpop.f32.mrb[41].mxu1 }
 0x72d   :  { %v2759_v61 = vpop.f32.mrb[42].mxu1  ;;  %v1624_v63 = vadd.f32 %v3219_v47, %v1623_v60 }
 0x72e   :  { %v1655_v62 = vmax.f32 %v1632_v14, 0.0  ;;  %v1635_v0 = vadd.f32 %v2759_v61, %v3219_v47  ;;  %v1626_v1 = vpop.f32.mrb[43].mxu1 }
 0x72f   :  { %v1627_v5 = vadd.f32 %v3219_v47, %v1626_v1  ;;  %v1653_v7 = vmax.f32 %v1624_v63, 0.0 }
 0x730   :  { %v1656_v3 = vmax.f32 %v1635_v0, 0.0  ;;  %1671 = vrot.lane.b32.xlu1 %v1655_v62, %s2939_s5 }
 0x731   :  { %v1654_v11 = vmax.f32 %v1627_v5, 0.0 }
 0x732   :  { %1673 = vrot.lane.b32.xlu0 %v1656_v3, %s2939_s5 }
 0x733   :  { %v2762_v10 = vpop.f32.mrb[44].mxu1 }
 0x734   :  { %v1648_v12 = vadd.f32 %v2762_v10, %v3219_v47  ;;  %v1639_v13 = vpop.f32.mrb[45].mxu1  ;;  %1667 = vrot.lane.b32.xlu1 %v1653_v7, %s2939_s5 }
 0x735   :  { %v1640_v15 = vadd.f32 %v3219_v47, %v1639_v13  ;;  %v2763_v16 = vpop.f32.mrb[46].mxu1 }
 0x736   :  { %v1659_v17 = vmax.f32 %v1648_v12, 0.0  ;;  %v1642_v18 = vpop.f32.mrb[47].mxu1  ;;  %1669 = vrot.lane.b32.xlu0 %v1654_v11, %s2939_s5 }
 0x737   :  { %v1643_v19 = vadd.f32 %v3219_v47, %v1642_v18  ;;  %v1657_v20 = vmax.f32 %v1640_v15, 0.0 }
 0x738   :  { %1679 = vrot.lane.b32.xlu1 %v1659_v17, %s2939_s5 }
 0x739   :  { %v1658_v21 = vmax.f32 %v1643_v19, 0.0 }
 0x73b   :  { %1677 = vrot.lane.b32.xlu0 %v1658_v21, %s2939_s5  ;;  %v2385_v21 = vld [vmem:[%s3564_s8] ss:$0 sm:$0xff] }
 0x73c   :  { %1675 = vrot.lane.b32.xlu1 %v1657_v20, %s2939_s5 }
 0x74b   :  { %v2792_v33 = vpop.f32.mrb[48].mxu1 }
 0x74c   :  { %v1921_v23 = vadd.f32 %v2792_v33, %v2367_v22  ;;  %v1912_v24 = vpop.f32.mrb[49].mxu1 }
 0x74d   :  { %v1913_v25 = vadd.f32 %v2367_v22, %v1912_v24  ;;  %v2793_v27 = vpop.f32.mrb[50].mxu1 }
 0x74e   :  { %v1924_v28 = vadd.f32 %v2793_v27, %v2367_v22  ;;  %v1915_v29 = vpop.f32.mrb[51].mxu1  ;;  %v1944_v31 = vmax.f32 %v1921_v23, 0.0 }
 0x74f   :  { %v1916_v30 = vadd.f32 %v2367_v22, %v1915_v29  ;;  %v1942_v47 = vmax.f32 %v1913_v25, 0.0 }
 0x750   :  { %v1945_v32 = vmax.f32 %v1924_v28, 0.0 }
 0x751   :  { %v1943_v34 = vmax.f32 %v1916_v30, 0.0 }
 0x752   :  { %v1950_v35 = vpack.c.bf16 %v1945_v32, %v1944_v31 }
 0x753   :  { %v1949_v36 = vpack.c.bf16 %v1943_v34, %v1942_v47  ;;  %v2796_v37 = vpop.f32.mrb[52].mxu1 }
 0x754   :  { %v1937_v38 = vadd.f32 %v2796_v37, %v2367_v22  ;;  %v1928_v39 = vpop.f32.mrb[53].mxu1 }
 0x755   :  { %v1929_v40 = vadd.f32 %v2367_v22, %v1928_v39  ;;  %v2797_v41 = vpop.f32.mrb[54].mxu1  ;;  %2814 = vmatprep.mubr.bf16.mxu0 %v1949_v36 }
 0x756   :  { %v1931_v42 = vpop.f32.mrb[55].mxu1  ;;  %2815 = vmatmul.mubr.bf16.vlgmr.msra.gmra.mrb[56].mxu0 %v1950_v35  ;;  %v1948_v44 = vmax.f32 %v1937_v38, 0.0 }
 0x757   :  { %v1932_v43 = vadd.f32 %v2367_v22, %v1931_v42  ;;  %2823 = vmatpush3.bf16.msra.mxu0 %v2931_v2  ;;  %v1946_v45 = vmax.f32 %v1929_v40, 0.0 }
 0x758   :  { %2824 = vmatprep.subr.bf16.mxu0 %v2932_v6  ;;  %v1952_v26 = vpack.c.bf16 %v1948_v44, %v1948_v44 }
 0x759   :  { %v1947_v46 = vmax.f32 %v1932_v43, 0.0 }
 0x75b   :  { %v1951_v58 = vpack.c.bf16 %v1947_v46, %v1946_v45  ;;  %2825 = vmatpush3.bf16.msra.mxu0 %v2932_v6 }
 0x75c   :  { %2826 = vmatprep.subr.bf16.mxu0 %v2933_v53 }
 0x75d   :  { %2818 = vmatprep.mubr.bf16.mxu0 %v1951_v58 }
 0x75e   :  { %2819 = vmatmul.mubr.bf16.gmra.mrb[60].mxu0 %v1952_v26 }
 0x75f   :  { %2827 = vmatpush3.bf16.msra.mxu0 %v2933_v53 }
 0x760   :  { %2828 = vmatprep.subr.bf16.mxu0 %v2934_v4 }
 0x763   :  { %2829 = vmatpush3.bf16.msra.mxu0 %v2934_v4 }
 0x7a2   :  { %v1672_v48 = vpop.permute.xlu1 %1671 }
 0x7a3   :  { %1691 = vst.msk [vmem:[%s3565_s9 + $0x10] sm:$0xff] %vm1688_vm6, %v1672_v48 }
 0x7a4   :  { %v1674_v49 = vpop.permute.xlu0 %1673 }
 0x7a5   :  { %1692 = vst.msk [vmem:[%s3565_s9 + $0x18] sm:$0xff] %vm1688_vm6, %v1674_v49 }
 0x7a6   :  { %v1668_v50 = vpop.permute.xlu1 %1667 }
 0x7a7   :  { %1689 = vst.msk [vmem:[%s3565_s9] sm:$0xff] %vm1688_vm6, %v1668_v50 }
 0x7a8   :  { %v1670_v51 = vpop.permute.xlu0 %1669 }
 0x7a9   :  { %1690 = vst.msk [vmem:[%s3565_s9 + $0x8] sm:$0xff] %vm1688_vm6, %v1670_v51 }
 0x7aa   :  { %v1680_v52 = vpop.permute.xlu1 %1679 }
 0x7ab   :  { %1696 = vst.msk [vmem:[%s3565_s9 + $0x30] sm:$0x3] %vm1695_vm7, %v1680_v52 }
 0x7ad   :  { %v1678_v54 = vpop.permute.xlu0 %1677 }
 0x7ae   :  { %1694 = vst.msk [vmem:[%s3565_s9 + $0x28] sm:$0xff] %vm1688_vm6, %v1678_v54  ;;  %v1676_v55 = vpop.permute.xlu1 %1675 }
 0x7af   :  { %1693 = vst.msk [vmem:[%s3565_s9 + $0x20] sm:$0xff] %vm1688_vm6, %v1676_v55 }
 0x829   :  { %v2816_v8 = vpop.f32.mrb[56].mxu0 }
 0x82a   :  { %v2067_v57 = vadd.f32 %v2816_v8, %v2376_v56  ;;  %v2058_v9 = vpop.f32.mrb[57].mxu0 }
 0x82b   :  { %v2059_v59 = vadd.f32 %v2376_v56, %v2058_v9  ;;  %v2817_v14 = vpop.f32.mrb[58].mxu0 }
 0x82c   :  { %v2070_v60 = vadd.f32 %v2817_v14, %v2376_v56  ;;  %v2061_v61 = vpop.f32.mrb[59].mxu0  ;;  %v2090_v63 = vmax.f32 %v2067_v57, 0.0 }
 0x82d   :  { %v2062_v62 = vadd.f32 %v2376_v56, %v2061_v61  ;;  %v2088_v1 = vmax.f32 %v2059_v59, 0.0 }
 0x82e   :  { %v2091_v0 = vmax.f32 %v2070_v60, 0.0 }
 0x82f   :  { %v2089_v2 = vmax.f32 %v2062_v62, 0.0 }
 0x830   :  { %v2096_v3 = vpack.c.bf16 %v2091_v0, %v2090_v63 }
 0x831   :  { %v2095_v5 = vpack.c.bf16 %v2089_v2, %v2088_v1  ;;  %v2820_v6 = vpop.f32.mrb[60].mxu0 }
 0x832   :  { %v2083_v7 = vadd.f32 %v2820_v6, %v2376_v56  ;;  %v2074_v10 = vpop.f32.mrb[61].mxu0 }
 0x833   :  { %v2075_v11 = vadd.f32 %v2376_v56, %v2074_v10  ;;  %v2821_v12 = vpop.f32.mrb[62].mxu0  ;;  %2830 = vmatprep.mubr.msk.bf16.mxu0 %vm478_vm1, %v2095_v5 }
 0x834   :  { %v2077_v13 = vpop.f32.mrb[63].mxu0  ;;  %2831 = vmatmul.mubr.msk.bf16.vlgmr.msra.gmra.mrb[64].mxu0 %vm478_vm1, %v2096_v3  ;;  %v2094_v16 = vmax.f32 %v2083_v7, 0.0 }
 0x835   :  { %v2078_v15 = vadd.f32 %v2376_v56, %v2077_v13  ;;  %v2092_v17 = vmax.f32 %v2075_v11, 0.0 }
 0x836   :  { %v2098_v20 = vpack.c.bf16 %v2094_v16, %v2094_v16 }
 0x837   :  { %v2093_v18 = vmax.f32 %v2078_v15, 0.0 }
 0x839   :  { %v2097_v19 = vpack.c.bf16 %v2093_v18, %v2092_v17 }
 0x83b   :  { %2834 = vmatprep.mubr.msk.bf16.mxu1 %vm478_vm1, %v2097_v19 }
 0x83c   :  { %2835 = vmatmul.mubr.msk.bf16.vlgmr.msra.gmra.mrb[56].mxu1 %vm478_vm1, %v2098_v20 }
 0x907   :  { %v2832_v22 = vpop.f32.mrb[64].mxu0 }
 0x908   :  { %v2193_v33 = vadd.f32 %v2832_v22, %v2385_v21  ;;  %v2184_v23 = vpop.f32.mrb[65].mxu0 }
 0x909   :  { %v2833_v24 = vpop.f32.mrb[66].mxu0  ;;  %v2185_v27 = vadd.f32 %v2385_v21, %v2184_v23 }
 0x90a   :  { %v2216_v25 = vmax.f32 %v2193_v33, 0.0  ;;  %v2196_v28 = vadd.f32 %v2833_v24, %v2385_v21  ;;  %v2187_v29 = vpop.f32.mrb[67].mxu0 }
 0x90b   :  { %v2188_v31 = vadd.f32 %v2385_v21, %v2187_v29  ;;  %v2214_v32 = vmax.f32 %v2185_v27, 0.0 }
 0x90c   :  { %v2217_v30 = vmax.f32 %v2196_v28, 0.0  ;;  %2232 = vrot.lane.b32.xlu0 %v2216_v25, %s2936_s30 }
 0x90d   :  { %v2215_v34 = vmax.f32 %v2188_v31, 0.0 }
 0x90e   :  { %2234 = vrot.lane.b32.xlu1 %v2217_v30, %s2936_s30 }
 0x90f   :  { %v2836_v47 = vpop.f32.mrb[56].mxu1 }
 0x910   :  { %v2200_v35 = vpop.f32.mrb[57].mxu1  ;;  %2228 = vrot.lane.b32.xlu0 %v2214_v32, %s2936_s30  ;;  %v2209_v39 = vadd.f32 %v2836_v47, %v2385_v21 }
 0x911   :  { %v2201_v36 = vadd.f32 %v2385_v21, %v2200_v35  ;;  %v2837_v37 = vpop.f32.mrb[58].mxu1 }
 0x912   :  { %v2203_v38 = vpop.f32.mrb[59].mxu1  ;;  %2230 = vrot.lane.b32.xlu1 %v2215_v34, %s2936_s30  ;;  %v2220_v43 = vmax.f32 %v2209_v39, 0.0 }
 0x913   :  { %v2218_v40 = vmax.f32 %v2201_v36, 0.0  ;;  %v2204_v41 = vadd.f32 %v2385_v21, %v2203_v38 }
 0x915   :  { %v2219_v42 = vmax.f32 %v2204_v41, 0.0  ;;  %2236 = vrot.lane.b32.xlu0 %v2218_v40, %s2936_s30 }
 0x917   :  { %2238 = vrot.lane.b32.xlu1 %v2219_v42, %s2936_s30 }
 0x919   :  { %2240 = vrot.lane.b32.xlu0 %v2220_v43, %s2936_s30 }
 0x97e   :  { %v2233_v44 = vpop.permute.xlu0 %2232 }
 0x97f   :  { %2252 = vst.msk [vmem:[%s3565_s9 + $0x10] sm:$0xff] %vm2249_vm8, %v2233_v44 }
 0x980   :  { %v2235_v45 = vpop.permute.xlu1 %2234 }
 0x981   :  { %2253 = vst.msk [vmem:[%s3565_s9 + $0x18] sm:$0xff] %vm2249_vm8, %v2235_v45 }
 0x982   :  { %v2229_v46 = vpop.permute.xlu0 %2228 }
 0x983   :  { %2250 = vst.msk [vmem:[%s3565_s9] sm:$0xff] %vm2249_vm8, %v2229_v46 }
 0x984   :  { %v2231_v58 = vpop.permute.xlu1 %2230 }
 0x985   :  { %2251 = vst.msk [vmem:[%s3565_s9 + $0x8] sm:$0xff] %vm2249_vm8, %v2231_v58 }
 0x987   :  { %v2237_v26 = vpop.permute.xlu0 %2236 }
 0x988   :  { %2254 = vst.msk [vmem:[%s3565_s9 + $0x20] sm:$0xff] %vm2249_vm8, %v2237_v26 }
 0x989   :  { %v2239_v48 = vpop.permute.xlu1 %2238 }
 0x98a   :  { %2255 = vst.msk [vmem:[%s3565_s9 + $0x28] sm:$0xff] %vm2249_vm8, %v2239_v48 }
 0x98b   :  { %v2241_v49 = vpop.permute.xlu0 %2240 }
 0x98c   :  { %2257 = vst.msk [vmem:[%s3565_s9 + $0x30] sm:$0x3] %vm2256_vm9, %v2241_v49 }

</bundles_post_ra>
